<compile_context>
chip_gen: v6e
topology: v6e:2x2x1
jax: 0.10.0
libtpu: 0.0.40
codegen_flags: <defaults>
</compile_context>

<pallas_src>
import functools

import jax
import jax.numpy as jnp
from jax import lax
from jax.experimental import pallas as pl
from jax.experimental.pallas import tpu as pltpu

BN_EPS = 1e-5  # PyTorch BatchNorm2d default


def _round_up(x, m):
    return (x + m - 1) // m * m


def _vmem_budget_bytes():
    """~75% of the per-core VMEM (48 MiB on v7x, 96 MiB on v5e/v6e); the remaining 25%
    is headroom for Mosaic internal scratch / semaphores."""
    cap = 128 * 1024 * 1024
    try:
        cap = int(getattr(pltpu.get_tpu_info(), "vmem_capacity_bytes", cap))
    except Exception:
        pass
    return int(cap) * 3 // 4


# ------------------------------------------------------------------------ pass-1 kernels
def _stats_kernel(p_ref, w_ref, sum_ref, sumsq_ref):
    """Per-channel sum / sum-of-squares of y = p @ w, accumulated into resident
    (1, Cout_pad) blocks across the inner ("arbitrary") M-tile grid axis.  The outer
    ("parallel") axis selects the per-TensorCore partial-stat block."""
    @pl.when(pl.program_id(1) == 0)
    def _():
        sum_ref[...] = jnp.zeros_like(sum_ref)
        sumsq_ref[...] = jnp.zeros_like(sumsq_ref)

    y = jnp.dot(p_ref[...], w_ref[...], preferred_element_type=jnp.float32)
    sum_ref[...] += jnp.sum(y, axis=0, keepdims=True)
    sumsq_ref[...] += jnp.sum(y * y, axis=0, keepdims=True)


def _stats_store_y_kernel(cout, p_ref, w_ref, sum_ref, sumsq_ref, y_ref):
    """Same as _stats_kernel, but also streams y (real-Cout width, low precision) back
    to HBM so pass 2 never has to touch the (much larger) patch matrix again."""
    @pl.when(pl.program_id(1) == 0)
    def _():
        sum_ref[...] = jnp.zeros_like(sum_ref)
        sumsq_ref[...] = jnp.zeros_like(sumsq_ref)

    y = jnp.dot(p_ref[...], w_ref[...], preferred_element_type=jnp.float32)
    sum_ref[...] += jnp.sum(y, axis=0, keepdims=True)
    sumsq_ref[...] += jnp.sum(y * y, axis=0, keepdims=True)
    y_ref[...] = y[:, :cout].astype(y_ref.dtype)


# ------------------------------------------------------------------------ pass-2 kernels
def _scale_shift_kernel(y_ref, scale_ref, shift_ref, o_ref):
    """Pure VPU pass: out = y * scale + shift (folded BatchNorm)."""
    y = y_ref[...].astype(jnp.float32)
    o_ref[...] = (y * scale_ref[...] + shift_ref[...]).astype(o_ref.dtype)


def _recompute_kernel(cout, p_ref, w_ref, scale_ref, shift_ref, o_ref):
    """Recompute the conv tile (only used when K <= 2*Cout) and apply folded BN."""
    y = jnp.dot(p_ref[...], w_ref[...], preferred_element_type=jnp.float32)
    o_ref[...] = (y[:, :cout] * scale_ref[...] + shift_ref[...]).astype(o_ref.dtype)


# ----------------------------------------------------------------------------- JAX glue
def _im2col_nhwc(xp, KH, KW, stride, dilation, Ho, Wo):
    """xp: padded NHWC input (N, Hp, Wp, Cin) -> (N*Ho*Wo, KH*KW*Cin), built exactly once."""
    N, Hp, Wp, Cin = xp.shape
    taps = []
    for i in range(KH):
        for j in range(KW):
            h0, w0 = i * dilation, j * dilation
            xs = lax.slice(
                xp,
                (0, h0, w0, 0),
                (N, h0 + (Ho - 1) * stride + 1, w0 + (Wo - 1) * stride + 1, Cin),
                strides=(1, stride, stride, 1),
            )  # (N, Ho, Wo, Cin)
            taps.append(xs)
    patches = jnp.stack(taps, axis=3)            # (N, Ho, Wo, KH*KW, Cin)
    return patches.reshape(N * Ho * Wo, KH * KW * Cin)


@functools.partial(
    jax.jit,
    static_argnames=("stride", "padding", "dilation", "tile_m", "out_dtype", "compute_dtype"),
)
def basic_conv(x_nchw, w_oihw, gamma, beta, *, stride, padding, dilation,
               tile_m=None, out_dtype=jnp.float32, compute_dtype=jnp.bfloat16):
    """Forward of BasicConv.  x_nchw: (N, Cin, H, W), w_oihw: (Cout, Cin, KH, KW).

    tile_m: rows of the im2col matrix per grid step (rounded to a multiple of 8 and
    clamped to the per-generation VMEM budget).  None -> auto-sized."""
    N, Cin, H, W = x_nchw.shape
    Cout, _, KH, KW = w_oihw.shape
    Ho = (H + 2 * padding - dilation * (KH - 1) - 1) // stride + 1
    Wo = (W + 2 * padding - dilation * (KW - 1) - 1) // stride + 1

    M = N * Ho * Wo
    K = KH * KW * Cin

    # Lane padding only for the (tiny) MXU-facing weight matrix; 256-wide on big Cout so
    # v6e/v7x's 256x256 MXUs fill, 128 otherwise (and always on small Cout).
    lane = 256 if (Cout >= 192 and _round_up(Cout, 256) <= Cout + Cout // 8) else 128
    Cout_pad = _round_up(Cout, lane)

    cdt = jnp.dtype(compute_dtype)
    odt = jnp.dtype(out_dtype)

    # Glue: NCHW -> NHWC (compute dtype), spatial pad, im2col built exactly once,
    # un-padded in K (kernels take (tile_m, K) blocks; Mosaic pads lanes inside VMEM).
    x_nhwc = jnp.transpose(x_nchw, (0, 2, 3, 1)).astype(cdt)
    xp = jnp.pad(x_nhwc, ((0, 0), (padding, padding), (padding, padding), (0, 0)))
    patches = _im2col_nhwc(xp, KH, KW, stride, dilation, Ho, Wo)            # (M, K)

    w_mat = jnp.transpose(w_oihw, (2, 3, 1, 0)).reshape(K, Cout)
    w_mat = jnp.pad(w_mat, ((0, 0), (0, Cout_pad - Cout))).astype(cdt)      # (K, Cout_pad)

    # Pass-2 strategy: re-reading patches costs ~K*itemsize bytes/row vs ~2*Cout*itemsize
    # to store + reload a low-precision y -> recompute only when K <= 2*Cout.
    store_y = K > 2 * Cout

    # tile_m: biggest M-tile (multiple of 8) whose double-buffered working set fits.
    budget = _vmem_budget_bytes()
    c_sz = cdt.itemsize
    row_p1 = 2 * K * c_sz + 2 * Cout_pad * 4 + (2 * Cout * c_sz if store_y else 0)
    row_p2 = ((2 * Cout * c_sz if store_y else 2 * K * c_sz)
              + 2 * Cout_pad * 4 + 2 * Cout * odt.itemsize)
    # Weights are grid-invariant but still double-buffered by default; count 2x here.
    # (pl.Buffered(1) on w_spec could reclaim half of this on v7x.)
    fixed = 2 * K * Cout_pad * c_sz + (1 << 20)
    tile_cap = max(8, (budget - fixed) // max(row_p1, row_p2))
    tile_cap = max(8, min(2048, tile_cap) // 8 * 8)
    if tile_m is None:
        tile_m = tile_cap
    tile_m = max(8, min(_round_up(int(tile_m), 8), tile_cap, _round_up(M, 8)))

    # Grid over M tiles; pass 1 additionally splits the tiles across 2 "parallel" shards
    # so the stats reduction uses both TensorCores on v7x (harmless serial loop on 1-TC).
    n_tiles = pl.cdiv(M, tile_m)
    num_shards = 2 if n_tiles >= 2 else 1
    n_tiles = _round_up(n_tiles, num_shards)
    M_pad = n_tiles * tile_m
    if M_pad != M:
        # Zero rows contribute 0 to sum/sumsq (conv has no bias); stats divide by real M.
        patches = jnp.pad(patches, ((0, M_pad - M), (0, 0)))
    tiles_per_shard = n_tiles // num_shards

    vmem_limit = int(budget)

    # ---------------- Pass 1: per-channel sum / sum-of-squares (+ optional y stream) ----
    p_spec1 = pl.BlockSpec((tile_m, K), lambda s, m: (s * tiles_per_shard + m, 0))
    w_spec1 = pl.BlockSpec((K, Cout_pad), lambda s, m: (0, 0))
    stat_spec = pl.BlockSpec((1, Cout_pad), lambda s, m: (0, s))   # per-shard partials

    out_shape1 = [jax.ShapeDtypeStruct((1, num_shards * Cout_pad), jnp.float32),
                  jax.ShapeDtypeStruct((1, num_shards * Cout_pad), jnp.float32)]
    out_specs1 = [stat_spec, stat_spec]
    if store_y:
        kern1 = functools.partial(_stats_store_y_kernel, Cout)
        out_shape1.append(jax.ShapeDtypeStruct((M_pad, Cout), cdt))
        out_specs1.append(
            pl.BlockSpec((tile_m, Cout), lambda s, m: (s * tiles_per_shard + m, 0)))
    else:
        kern1 = _stats_kernel

    res1 = pl.pallas_call(
        kern1,
        out_shape=tuple(out_shape1),
        grid=(num_shards, tiles_per_shard),
        in_specs=[p_spec1, w_spec1],
        out_specs=tuple(out_specs1),
        compiler_params=pltpu.CompilerParams(
            dimension_semantics=("parallel", "arbitrary"),
            vmem_limit_bytes=vmem_limit),
    )(patches, w_mat)
    s_raw, ss_raw = res1[0], res1[1]
    y_lp = res1[2] if store_y else None

    # Reduce the per-shard partials and fold BatchNorm (training-mode, biased variance)
    # into a single scale/shift.
    s_sum = s_raw.reshape(num_shards, Cout_pad).sum(axis=0)[:Cout]
    ss_sum = ss_raw.reshape(num_shards, Cout_pad).sum(axis=0)[:Cout]
    inv_m = 1.0 / M
    mean = s_sum * inv_m
    # TODO(synk): switch to a shifted/two-pass variance if E[y^2]-E[y]^2 cancellation
    #             ever matters for the target precision.
    var = jnp.maximum(ss_sum * inv_m - mean * mean, 0.0)
    inv_std = lax.rsqrt(var + BN_EPS)
    scale = gamma.astype(jnp.float32) * inv_std            # (Cout,)
    shift = beta.astype(jnp.float32) - mean * scale        # (Cout,)
    scale2 = scale.reshape(1, Cout)
    shift2 = shift.reshape(1, Cout)

    # ---------------- Pass 2: apply folded scale/shift (parallel over M tiles) ----------
    o_spec = pl.BlockSpec((tile_m, Cout), lambda m: (m, 0))
    v_spec = pl.BlockSpec((1, Cout), lambda m: (0, 0))

    if store_y:
        out_flat = pl.pallas_call(
            _scale_shift_kernel,
            out_shape=jax.ShapeDtypeStruct((M_pad, Cout), odt),
            grid=(n_tiles,),
            in_specs=[pl.BlockSpec((tile_m, Cout), lambda m: (m, 0)), v_spec, v_spec],
            out_specs=o_spec,
            compiler_params=pltpu.CompilerParams(
                dimension_semantics=("parallel",),
                vmem_limit_bytes=vmem_limit),
        )(y_lp, scale2, shift2)
    else:
        out_flat = pl.pallas_call(
            functools.partial(_recompute_kernel, Cout),
            out_shape=jax.ShapeDtypeStruct((M_pad, Cout), odt),
            grid=(n_tiles,),
            in_specs=[pl.BlockSpec((tile_m, K), lambda m: (m, 0)),
                      pl.BlockSpec((K, Cout_pad), lambda m: (0, 0)),
                      v_spec, v_spec],
            out_specs=o_spec,
            compiler_params=pltpu.CompilerParams(
                dimension_semantics=("parallel",),
                vmem_limit_bytes=vmem_limit),
        )(patches, w_mat, scale2, shift2)

    # TODO(synk): emit NCHW-transposed tiles in-kernel to drop this XLA slice+transpose.
    out = out_flat[:M].reshape(N, Ho, Wo, Cout)
    return jnp.transpose(out, (0, 3, 1, 2))                 # back to NCHW


# -------------------------------------------------------------------------- reference
def _reference(x, w, gamma, beta, stride, padding, dilation):
    y = lax.conv_general_dilated(
        x, w, window_strides=(stride, stride),
        padding=[(padding, padding), (padding, padding)],
        rhs_dilation=(dilation, dilation),
        dimension_numbers=("NCHW", "OIHW", "NCHW"),
    )
    mean = y.mean(axis=(0, 2, 3), keepdims=True)
    var = ((y - mean) ** 2).mean(axis=(0, 2, 3), keepdims=True)
    return (y - mean) * lax.rsqrt(var + BN_EPS) * gamma.reshape(1, -1, 1, 1) \
        + beta.reshape(1, -1, 1, 1)


if __name__ == "__main__":
    key = jax.random.PRNGKey(0)

    configs = [
        # y-store path (K=36 > 2*Cout), auto tile_m, single stats shard.
        dict(N=2, Cin=4, H=16, W=16, Cout=8, k=3, stride=1, padding=1, dilation=1, tile_m=None),
        # 1x1 conv -> recompute path (K=4 <= 2*Cout).
        dict(N=2, Cin=4, H=16, W=16, Cout=8, k=1, stride=1, padding=0, dilation=1, tile_m=None),
        # stride+dilation, M not tile-aligned (pad path), forced small/unaligned tile_m
        # -> 2-shard stats reduction.
        dict(N=2, Cin=3, H=15, W=15, Cout=8, k=3, stride=2, padding=1, dilation=2, tile_m=20),
    ]

    for idx, c in enumerate(configs):
        key, kx, kw, kg, kb = jax.random.split(key, 5)
        x = jax.random.normal(kx, (c["N"], c["Cin"], c["H"], c["W"]), dtype=jnp.float32)
        w = jax.random.normal(kw, (c["Cout"], c["Cin"], c["k"], c["k"]), dtype=jnp.float32) * 0.1
        gamma = 1.0 + 0.1 * jax.random.normal(kg, (c["Cout"],), dtype=jnp.float32)
        beta = 0.1 * jax.random.normal(kb, (c["Cout"],), dtype=jnp.float32)

        out = basic_conv(x, w, gamma, beta, stride=c["stride"], padding=c["padding"],
                         dilation=c["dilation"], tile_m=c["tile_m"])
        out = jax.block_until_ready(out)

        ref = _reference(x, w, gamma, beta, c["stride"], c["padding"], c["dilation"])
        assert out.shape == ref.shape, (idx, out.shape, ref.shape)
        err = float(jnp.max(jnp.abs(out - ref)))
        # bf16 MXU feed + bf16 y intermediate -> loose-ish tolerance vs f32 reference.
        assert jnp.allclose(out, ref, atol=5e-2, rtol=5e-2), (idx, err)

    print("KERNEL_OK")
</pallas_src>

<mosaic_0001>
module attributes {stable_mosaic.version = 11 : i64} {
  func.func @_scale_shift_kernel(%arg0: i32, %arg1: memref<512x8xbf16, #tpu.memory_space<vmem>>, %arg2: memref<1x8xf32, #tpu.memory_space<vmem>>, %arg3: memref<1x8xf32, #tpu.memory_space<vmem>>, %arg4: memref<512x8xf32, #tpu.memory_space<vmem>>) attributes {dimension_semantics = [#tpu.dimension_semantics<parallel>], iteration_bounds = array<i64: 1>, scalar_prefetch = 0 : i64, scratch_operands = 0 : i64, tpu.core_type = #tpu.core_type<tc>, window_params = [{transform_indices = @transform_0, window_bounds = array<i64: 512, 8>}, {pipeline_mode = #tpu.pipeline_mode<synchronous>, transform_indices = @transform_1, window_bounds = array<i64: 1, 8>}, {pipeline_mode = #tpu.pipeline_mode<synchronous>, transform_indices = @transform_2, window_bounds = array<i64: 1, 8>}, {transform_indices = @transform_3, window_bounds = array<i64: 512, 8>}]} {
    %c0 = arith.constant 0 : index
    %c0_0 = arith.constant 0 : index
    %0 = vector.load %arg1[%c0, %c0_0] : memref<512x8xbf16, #tpu.memory_space<vmem>>, vector<512x8xbf16>
    %1 = arith.extf %0 : vector<512x8xbf16> to vector<512x8xf32>
    %c0_1 = arith.constant 0 : index
    %c0_2 = arith.constant 0 : index
    %2 = vector.load %arg2[%c0_1, %c0_2] : memref<1x8xf32, #tpu.memory_space<vmem>>, vector<1x8xf32>
    %3 = vector.broadcast %2 : vector<1x8xf32> to vector<512x8xf32>
    %4 = arith.mulf %1, %3 : vector<512x8xf32>
    %c0_3 = arith.constant 0 : index
    %c0_4 = arith.constant 0 : index
    %5 = vector.load %arg3[%c0_3, %c0_4] : memref<1x8xf32, #tpu.memory_space<vmem>>, vector<1x8xf32>
    %6 = vector.broadcast %5 : vector<1x8xf32> to vector<512x8xf32>
    %7 = arith.addf %4, %6 : vector<512x8xf32>
    %c0_5 = arith.constant 0 : index
    %c0_6 = arith.constant 0 : index
    %8 = vector.load %arg4[%c0_5, %c0_6] : memref<512x8xf32, #tpu.memory_space<vmem>>, vector<512x8xf32>
    tpu.vector_store %arg4[%c0_5, %c0_6], %7 {strides = array<i32>} : memref<512x8xf32, #tpu.memory_space<vmem>>, vector<512x8xf32>,
    return
  }
  func.func @transform_0(%arg0: i32) -> (i32, i32) {
    %c0_i32 = arith.constant 0 : i32
    %c0_i32_0 = arith.constant 0 : i32
    return %arg0, %c0_i32 : i32, i32
  }
  func.func @transform_1(%arg0: i32) -> (i32, i32) {
    %c0_i32 = arith.constant 0 : i32
    %c0_i32_0 = arith.constant 0 : i32
    %c0_i32_1 = arith.constant 0 : i32
    return %c0_i32, %c0_i32_0 : i32, i32
  }
  func.func @transform_2(%arg0: i32) -> (i32, i32) {
    %c0_i32 = arith.constant 0 : i32
    %c0_i32_0 = arith.constant 0 : i32
    %c0_i32_1 = arith.constant 0 : i32
    return %c0_i32, %c0_i32_0 : i32, i32
  }
  func.func @transform_3(%arg0: i32) -> (i32, i32) {
    %c0_i32 = arith.constant 0 : i32
    %c0_i32_0 = arith.constant 0 : i32
    return %arg0, %c0_i32 : i32, i32
  }
}

module attributes {stable_mosaic.version = 11 : i64} {
  func.func @_stats_store_y_kernel(%arg0: i32, %arg1: i32, %arg2: memref<512x36xbf16, #tpu.memory_space<vmem>>, %arg3: memref<36x128xbf16, #tpu.memory_space<vmem>>, %arg4: memref<1x128xf32, #tpu.memory_space<vmem>>, %arg5: memref<1x128xf32, #tpu.memory_space<vmem>>, %arg6: memref<512x8xbf16, #tpu.memory_space<vmem>>) attributes {dimension_semantics = [#tpu.dimension_semantics<parallel>, #tpu.dimension_semantics<arbitrary>], iteration_bounds = array<i64: 1, 1>, scalar_prefetch = 0 : i64, scratch_operands = 0 : i64, tpu.core_type = #tpu.core_type<tc>, window_params = [{transform_indices = @transform_0, window_bounds = array<i64: 512, 36>}, {pipeline_mode = #tpu.pipeline_mode<synchronous>, transform_indices = @transform_1, window_bounds = array<i64: 36, 128>}, {transform_indices = @transform_2, window_bounds = array<i64: 1, 128>}, {transform_indices = @transform_3, window_bounds = array<i64: 1, 128>}, {transform_indices = @transform_4, window_bounds = array<i64: 512, 8>}]} {
    %c0_i32 = arith.constant 0 : i32
    %0 = arith.cmpi eq, %arg1, %c0_i32 : i32
    %1 = arith.extui %0 : i1 to i32
    %c0_i32_0 = arith.constant 0 : i32
    %2 = arith.cmpi ne, %1, %c0_i32_0 : i32
    scf.if %2 {
      %cst_16 = arith.constant 0.000000e+00 : f32
      %20 = vector.broadcast %cst_16 : f32 to vector<1x128xf32>
      %c0_17 = arith.constant 0 : index
      %c0_18 = arith.constant 0 : index
      %21 = vector.load %arg4[%c0_17, %c0_18] : memref<1x128xf32, #tpu.memory_space<vmem>>, vector<1x128xf32>
      tpu.vector_store %arg4[%c0_17, %c0_18], %20 {strides = array<i32>} : memref<1x128xf32, #tpu.memory_space<vmem>>, vector<1x128xf32>,
      %cst_19 = arith.constant 0.000000e+00 : f32
      %22 = vector.broadcast %cst_19 : f32 to vector<1x128xf32>
      %c0_20 = arith.constant 0 : index
      %c0_21 = arith.constant 0 : index
      %23 = vector.load %arg5[%c0_20, %c0_21] : memref<1x128xf32, #tpu.memory_space<vmem>>, vector<1x128xf32>
      tpu.vector_store %arg5[%c0_20, %c0_21], %22 {strides = array<i32>} : memref<1x128xf32, #tpu.memory_space<vmem>>, vector<1x128xf32>,
    } else {
    }
    %c0 = arith.constant 0 : index
    %c0_1 = arith.constant 0 : index
    %3 = vector.load %arg2[%c0, %c0_1] : memref<512x36xbf16, #tpu.memory_space<vmem>>, vector<512x36xbf16>
    %c0_2 = arith.constant 0 : index
    %c0_3 = arith.constant 0 : index
    %4 = vector.load %arg3[%c0_2, %c0_3] : memref<36x128xbf16, #tpu.memory_space<vmem>>, vector<36x128xbf16>
    %cst = arith.constant dense<0.000000e+00> : vector<512x128xf32>
    %5 = tpu.matmul %3, %4, %cst {dimension_numbers = #tpu.dot_dimension_numbers<[1], [0], [0], [1], [0, 0, 1, 1], [], []>} : vector<512x36xbf16>, vector<36x128xbf16>, vector<512x128xf32> -> vector<512x128xf32>
    %c0_4 = arith.constant 0 : index
    %c0_5 = arith.constant 0 : index
    %6 = vector.load %arg4[%c0_4, %c0_5] : memref<1x128xf32, #tpu.memory_space<vmem>>, vector<1x128xf32>
    %cst_6 = arith.constant dense<0.000000e+00> : vector<128xf32>
    %7 = vector.multi_reduction <add>, %5, %cst_6 [0] : vector<512x128xf32> to vector<128xf32>
    %8 = vector.shape_cast %7 : vector<128xf32> to vector<1x128xf32>
    %9 = arith.addf %6, %8 : vector<1x128xf32>
    %c0_7 = arith.constant 0 : index
    %c0_8 = arith.constant 0 : index
    %10 = vector.load %arg4[%c0_7, %c0_8] : memref<1x128xf32, #tpu.memory_space<vmem>>, vector<1x128xf32>
    tpu.vector_store %arg4[%c0_7, %c0_8], %9 {strides = array<i32>} : memref<1x128xf32, #tpu.memory_space<vmem>>, vector<1x128xf32>,
    %c0_9 = arith.constant 0 : index
    %c0_10 = arith.constant 0 : index
    %11 = vector.load %arg5[%c0_9, %c0_10] : memref<1x128xf32, #tpu.memory_space<vmem>>, vector<1x128xf32>
    %12 = arith.mulf %5, %5 : vector<512x128xf32>
    %cst_11 = arith.constant dense<0.000000e+00> : vector<128xf32>
    %13 = vector.multi_reduction <add>, %12, %cst_11 [0] : vector<512x128xf32> to vector<128xf32>
    %14 = vector.shape_cast %13 : vector<128xf32> to vector<1x128xf32>
    %15 = arith.addf %11, %14 : vector<1x128xf32>
    %c0_12 = arith.constant 0 : index
    %c0_13 = arith.constant 0 : index
    %16 = vector.load %arg5[%c0_12, %c0_13] : memref<1x128xf32, #tpu.memory_space<vmem>>, vector<1x128xf32>
    tpu.vector_store %arg5[%c0_12, %c0_13], %15 {strides = array<i32>} : memref<1x128xf32, #tpu.memory_space<vmem>>, vector<1x128xf32>,
    %17 = vector.extract_strided_slice %5 {offsets = [0, 0], sizes = [512, 8], strides = [1, 1]} : vector<512x128xf32> to vector<512x8xf32>
    %18 = arith.truncf %17 : vector<512x8xf32> to vector<512x8xbf16>
    %c0_14 = arith.constant 0 : index
    %c0_15 = arith.constant 0 : index
    %19 = vector.load %arg6[%c0_14, %c0_15] : memref<512x8xbf16, #tpu.memory_space<vmem>>, vector<512x8xbf16>
    tpu.vector_store %arg6[%c0_14, %c0_15], %18 {strides = array<i32>} : memref<512x8xbf16, #tpu.memory_space<vmem>>, vector<512x8xbf16>,
    return
  }
  func.func @transform_0(%arg0: i32, %arg1: i32) -> (i32, i32) {
    %c1_i32 = arith.constant 1 : i32
    %0 = arith.muli %arg0, %c1_i32 : i32
    %1 = arith.addi %0, %arg1 : i32
    %c0_i32 = arith.constant 0 : i32
    %c0_i32_0 = arith.constant 0 : i32
    return %1, %c0_i32 : i32, i32
  }
  func.func @transform_1(%arg0: i32, %arg1: i32) -> (i32, i32) {
    %c0_i32 = arith.constant 0 : i32
    %c0_i32_0 = arith.constant 0 : i32
    %c0_i32_1 = arith.constant 0 : i32
    return %c0_i32, %c0_i32_0 : i32, i32
  }
  func.func @transform_2(%arg0: i32, %arg1: i32) -> (i32, i32) {
    %c0_i32 = arith.constant 0 : i32
    %c0_i32_0 = arith.constant 0 : i32
    return %c0_i32, %arg0 : i32, i32
  }
  func.func @transform_3(%arg0: i32, %arg1: i32) -> (i32, i32) {
    %c0_i32 = arith.constant 0 : i32
    %c0_i32_0 = arith.constant 0 : i32
    return %c0_i32, %arg0 : i32, i32
  }
  func.func @transform_4(%arg0: i32, %arg1: i32) -> (i32, i32) {
    %c1_i32 = arith.constant 1 : i32
    %0 = arith.muli %arg0, %c1_i32 : i32
    %1 = arith.addi %0, %arg1 : i32
    %c0_i32 = arith.constant 0 : i32
    %c0_i32_0 = arith.constant 0 : i32
    return %1, %c0_i32 : i32, i32
  }
}

</mosaic_0001>

<bundles_post_ra>
// kernel: basic_conv.3
= control target key start
LH: loop header
LB: loop body
LE: loop exit
PB: predicated region body
PF: predicated region fallthrough
CT: control target
= control target key end

     0   :  { %vm284_vm0 = vcmask 64512   ;;  %s1024_s0 = inlined_call_operand.vmem [shape: bf16[512,8], index: 0, kind: input, shape index: {}]   ;;  %s1025_s1 = inlined_call_operand.vmem [shape: f32[1,8], index: 1, kind: input, shape index: {}]   ;;  %s1026_s2 = inlined_call_operand.vmem [shape: f32[1,8], index: 2, kind: input, shape index: {}]   ;;  %s1027_s3 = inlined_call_operand.vmem [shape: f32[512,8], index: 3, kind: output, shape index: {}]  }
   0x1   :  { %v356_v0 = vld [vmem:[%s1024_s0] sm:$0xff]   ;;  %v483_v4 = vld [vmem:[%s1024_s0 + $0x8] sm:$0xff]   ;;  %v484_v5 = vld [vmem:[%s1024_s0 + $0x10] sm:$0xff]  }
   0x2   :  { %v540_v1 = vld [vmem:[%s1025_s1] ss:$0 sm:$0xff]  ;;  %v357_v2 = vunpack.c.l.bf16 %v356_v0  ;;  %v358_v3 = vunpack.c.h.bf16 %v356_v0  ;;  %v485_v6 = vld [vmem:[%s1024_s0 + $0x18] sm:$0xff]   ;;  %v361_v8 = vunpack.c.l.bf16 %v483_v4  ;;  %v362_v9 = vunpack.c.h.bf16 %v483_v4  ;;  %v487_v25 = vld [vmem:[%s1024_s0 + $0x28] sm:$0xff]  }
   0x3   :  { %v554_v7 = vld [vmem:[%s1026_s2] ss:$0 sm:$0xff]  ;;  %v365_v10 = vunpack.c.l.bf16 %v484_v5  ;;  %v366_v11 = vunpack.c.h.bf16 %v484_v5  ;;  %v369_v14 = vunpack.c.l.bf16 %v485_v6  ;;  %v370_v15 = vunpack.c.h.bf16 %v485_v6  ;;  %v488_v26 = vld [vmem:[%s1024_s0 + $0x30] sm:$0xff]   ;;  %v489_v31 = vld [vmem:[%s1024_s0 + $0x38] sm:$0xff]  }
   0x4   :  { %v149_v12 = vmul.f32 %v357_v2, %v540_v1  ;;  %v150_v13 = vmul.f32 %v358_v3, %v540_v1  ;;  %v151_v16 = vmul.f32 %v361_v8, %v540_v1  ;;  %v152_v17 = vmul.f32 %v362_v9, %v540_v1  ;;  %v486_v20 = vld [vmem:[%s1024_s0 + $0x20] sm:$0xff]   ;;  %v491_v53 = vld [vmem:[%s1024_s0 + $0x48] sm:$0xff]   ;;  %v492_v54 = vld [vmem:[%s1024_s0 + $0x50] sm:$0xff]  }
   0x5   :  { %v153_v18 = vmul.f32 %v365_v10, %v540_v1  ;;  %v154_v19 = vmul.f32 %v366_v11, %v540_v1  ;;  %v155_v23 = vmul.f32 %v369_v14, %v540_v1  ;;  %v156_v24 = vmul.f32 %v370_v15, %v540_v1  ;;  %v490_v48 = vld [vmem:[%s1024_s0 + $0x40] sm:$0xff]   ;;  %v493_v59 = vld [vmem:[%s1024_s0 + $0x58] sm:$0xff]  }
   0x6   :  { %v220_v21 = vadd.f32 %v554_v7, %v149_v12  ;;  %v221_v22 = vadd.f32 %v554_v7, %v150_v13  ;;  %v222_v27 = vadd.f32 %v554_v7, %v151_v16  ;;  %v223_v28 = vadd.f32 %v554_v7, %v152_v17  ;;  %v494_v14 = vld [vmem:[%s1024_s0 + $0x60] sm:$0xff]  }
   0x7   :  { %v224_v29 = vadd.f32 %v554_v7, %v153_v18  ;;  %v225_v30 = vadd.f32 %v554_v7, %v154_v19  ;;  %v226_v32 = vadd.f32 %v554_v7, %v155_v23  ;;  %v227_v33 = vadd.f32 %v554_v7, %v156_v24  ;;  %v495_v19 = vld [vmem:[%s1024_s0 + $0x68] sm:$0xff]  }
   0x8   :  { %285 = vst.msk [vmem:[%s1027_s3] sm:$0xff] %vm284_vm0, %v220_v21  ;;  %286 = vst.msk [vmem:[%s1027_s3 + $0x8] sm:$0xff] %vm284_vm0, %v221_v22  ;;  %v373_v34 = vunpack.c.l.bf16 %v486_v20  ;;  %v374_v35 = vunpack.c.h.bf16 %v486_v20  ;;  %v377_v36 = vunpack.c.l.bf16 %v487_v25  ;;  %v378_v37 = vunpack.c.h.bf16 %v487_v25  ;;  %v496_v20 = vld [vmem:[%s1024_s0 + $0x70] sm:$0xff]   ;;  %v497_v25 = vld [vmem:[%s1024_s0 + $0x78] sm:$0xff]  }
   0x9   :  { %287 = vst.msk [vmem:[%s1027_s3 + $0x10] sm:$0xff] %vm284_vm0, %v222_v27  ;;  %288 = vst.msk [vmem:[%s1027_s3 + $0x18] sm:$0xff] %vm284_vm0, %v223_v28  ;;  %v381_v38 = vunpack.c.l.bf16 %v488_v26  ;;  %v382_v39 = vunpack.c.h.bf16 %v488_v26  ;;  %v385_v42 = vunpack.c.l.bf16 %v489_v31  ;;  %v386_v43 = vunpack.c.h.bf16 %v489_v31 }
   0xa   :  { %289 = vst.msk [vmem:[%s1027_s3 + $0x20] sm:$0xff] %vm284_vm0, %v224_v29  ;;  %290 = vst.msk [vmem:[%s1027_s3 + $0x28] sm:$0xff] %vm284_vm0, %v225_v30  ;;  %v157_v40 = vmul.f32 %v373_v34, %v540_v1  ;;  %v158_v41 = vmul.f32 %v374_v35, %v540_v1  ;;  %v159_v44 = vmul.f32 %v377_v36, %v540_v1  ;;  %v389_v62 = vunpack.c.l.bf16 %v490_v48 }
   0xb   :  { %291 = vst.msk [vmem:[%s1027_s3 + $0x30] sm:$0xff] %vm284_vm0, %v226_v32  ;;  %292 = vst.msk [vmem:[%s1027_s3 + $0x38] sm:$0xff] %vm284_vm0, %v227_v33  ;;  %v160_v45 = vmul.f32 %v378_v37, %v540_v1  ;;  %v161_v46 = vmul.f32 %v381_v38, %v540_v1  ;;  %v162_v47 = vmul.f32 %v382_v39, %v540_v1  ;;  %v390_v63 = vunpack.c.h.bf16 %v490_v48  ;;  %v500_v48 = vld [vmem:[%s1024_s0 + $0x90] sm:$0xff]  }
   0xc   :  { %v228_v49 = vadd.f32 %v554_v7, %v157_v40  ;;  %v229_v50 = vadd.f32 %v554_v7, %v158_v41  ;;  %v163_v51 = vmul.f32 %v385_v42, %v540_v1  ;;  %v164_v52 = vmul.f32 %v386_v43, %v540_v1  ;;  %v498_v42 = vld [vmem:[%s1024_s0 + $0x80] sm:$0xff]  }
   0xd   :  { %v230_v55 = vadd.f32 %v554_v7, %v159_v44  ;;  %v231_v56 = vadd.f32 %v554_v7, %v160_v45  ;;  %v232_v57 = vadd.f32 %v554_v7, %v161_v46  ;;  %v233_v58 = vadd.f32 %v554_v7, %v162_v47  ;;  %v499_v47 = vld [vmem:[%s1024_s0 + $0x88] sm:$0xff]  }
   0xe   :  { %293 = vst.msk [vmem:[%s1027_s3 + $0x40] sm:$0xff] %vm284_vm0, %v228_v49  ;;  %294 = vst.msk [vmem:[%s1027_s3 + $0x48] sm:$0xff] %vm284_vm0, %v229_v50  ;;  %v234_v60 = vadd.f32 %v554_v7, %v163_v51  ;;  %v235_v61 = vadd.f32 %v554_v7, %v164_v52  ;;  %v393_v0 = vunpack.c.l.bf16 %v491_v53  ;;  %v394_v2 = vunpack.c.h.bf16 %v491_v53  ;;  %v501_v53 = vld [vmem:[%s1024_s0 + $0x98] sm:$0xff]  }
   0xf   :  { %295 = vst.msk [vmem:[%s1027_s3 + $0x50] sm:$0xff] %vm284_vm0, %v230_v55  ;;  %296 = vst.msk [vmem:[%s1027_s3 + $0x58] sm:$0xff] %vm284_vm0, %v231_v56  ;;  %v397_v3 = vunpack.c.l.bf16 %v492_v54  ;;  %v398_v4 = vunpack.c.h.bf16 %v492_v54  ;;  %v165_v5 = vmul.f32 %v389_v62, %v540_v1  ;;  %v166_v6 = vmul.f32 %v390_v63, %v540_v1 }
  0x10   :  { %297 = vst.msk [vmem:[%s1027_s3 + $0x60] sm:$0xff] %vm284_vm0, %v232_v57  ;;  %298 = vst.msk [vmem:[%s1027_s3 + $0x68] sm:$0xff] %vm284_vm0, %v233_v58  ;;  %v401_v8 = vunpack.c.l.bf16 %v493_v59  ;;  %v402_v9 = vunpack.c.h.bf16 %v493_v59  ;;  %v167_v10 = vmul.f32 %v393_v0, %v540_v1  ;;  %v168_v11 = vmul.f32 %v394_v2, %v540_v1 }
  0x11   :  { %299 = vst.msk [vmem:[%s1027_s3 + $0x70] sm:$0xff] %vm284_vm0, %v234_v60  ;;  %300 = vst.msk [vmem:[%s1027_s3 + $0x78] sm:$0xff] %vm284_vm0, %v235_v61  ;;  %v169_v12 = vmul.f32 %v397_v3, %v540_v1  ;;  %v170_v13 = vmul.f32 %v398_v4, %v540_v1  ;;  %v236_v15 = vadd.f32 %v554_v7, %v165_v5  ;;  %v405_v28 = vunpack.c.l.bf16 %v494_v14 }
  0x12   :  { %v237_v16 = vadd.f32 %v554_v7, %v166_v6  ;;  %v171_v17 = vmul.f32 %v401_v8, %v540_v1  ;;  %v172_v18 = vmul.f32 %v402_v9, %v540_v1  ;;  %v238_v21 = vadd.f32 %v554_v7, %v167_v10  ;;  %v502_v8 = vld [vmem:[%s1024_s0 + $0xa0] sm:$0xff]  }
  0x13   :  { %v239_v22 = vadd.f32 %v554_v7, %v168_v11  ;;  %v240_v23 = vadd.f32 %v554_v7, %v169_v12  ;;  %v241_v24 = vadd.f32 %v554_v7, %v170_v13  ;;  %301 = vst.msk [vmem:[%s1027_s3 + $0x80] sm:$0xff] %vm284_vm0, %v236_v15  ;;  %v406_v29 = vunpack.c.h.bf16 %v494_v14  ;;  %v503_v13 = vld [vmem:[%s1024_s0 + $0xa8] sm:$0xff]   ;;  %v504_v14 = vld [vmem:[%s1024_s0 + $0xb0] sm:$0xff]  }
  0x14   :  { %302 = vst.msk [vmem:[%s1027_s3 + $0x88] sm:$0xff] %vm284_vm0, %v237_v16  ;;  %v242_v26 = vadd.f32 %v554_v7, %v171_v17  ;;  %v243_v27 = vadd.f32 %v554_v7, %v172_v18  ;;  %303 = vst.msk [vmem:[%s1027_s3 + $0x90] sm:$0xff] %vm284_vm0, %v238_v21  ;;  %v409_v30 = vunpack.c.l.bf16 %v495_v19  ;;  %v410_v31 = vunpack.c.h.bf16 %v495_v19  ;;  %v505_v19 = vld [vmem:[%s1024_s0 + $0xb8] sm:$0xff]  }
  0x15   :  { %304 = vst.msk [vmem:[%s1027_s3 + $0x98] sm:$0xff] %vm284_vm0, %v239_v22  ;;  %305 = vst.msk [vmem:[%s1027_s3 + $0xa0] sm:$0xff] %vm284_vm0, %v240_v23  ;;  %v413_v32 = vunpack.c.l.bf16 %v496_v20  ;;  %v414_v33 = vunpack.c.h.bf16 %v496_v20  ;;  %v173_v34 = vmul.f32 %v405_v28, %v540_v1  ;;  %v174_v35 = vmul.f32 %v406_v29, %v540_v1 }
  0x16   :  { %306 = vst.msk [vmem:[%s1027_s3 + $0xa8] sm:$0xff] %vm284_vm0, %v241_v24  ;;  %307 = vst.msk [vmem:[%s1027_s3 + $0xb0] sm:$0xff] %vm284_vm0, %v242_v26  ;;  %v417_v36 = vunpack.c.l.bf16 %v497_v25  ;;  %v418_v37 = vunpack.c.h.bf16 %v497_v25  ;;  %v175_v38 = vmul.f32 %v409_v30, %v540_v1  ;;  %v176_v39 = vmul.f32 %v410_v31, %v540_v1 }
  0x17   :  { %308 = vst.msk [vmem:[%s1027_s3 + $0xb8] sm:$0xff] %vm284_vm0, %v243_v27  ;;  %v177_v40 = vmul.f32 %v413_v32, %v540_v1  ;;  %v178_v41 = vmul.f32 %v414_v33, %v540_v1  ;;  %v244_v43 = vadd.f32 %v554_v7, %v173_v34  ;;  %v245_v44 = vadd.f32 %v554_v7, %v174_v35 }
  0x18   :  { %v179_v45 = vmul.f32 %v417_v36, %v540_v1  ;;  %v180_v46 = vmul.f32 %v418_v37, %v540_v1  ;;  %v246_v49 = vadd.f32 %v554_v7, %v175_v38  ;;  %v247_v50 = vadd.f32 %v554_v7, %v176_v39  ;;  %v506_v36 = vld [vmem:[%s1024_s0 + $0xc0] sm:$0xff]  }
  0x19   :  { %v248_v51 = vadd.f32 %v554_v7, %v177_v40  ;;  %v249_v52 = vadd.f32 %v554_v7, %v178_v41  ;;  %309 = vst.msk [vmem:[%s1027_s3 + $0xc0] sm:$0xff] %vm284_vm0, %v244_v43  ;;  %310 = vst.msk [vmem:[%s1027_s3 + $0xc8] sm:$0xff] %vm284_vm0, %v245_v44  ;;  %v421_v56 = vunpack.c.l.bf16 %v498_v42  ;;  %v422_v57 = vunpack.c.h.bf16 %v498_v42  ;;  %v507_v41 = vld [vmem:[%s1024_s0 + $0xc8] sm:$0xff]   ;;  %v508_v42 = vld [vmem:[%s1024_s0 + $0xd0] sm:$0xff]  }
  0x1a   :  { %v250_v54 = vadd.f32 %v554_v7, %v179_v45  ;;  %v251_v55 = vadd.f32 %v554_v7, %v180_v46  ;;  %311 = vst.msk [vmem:[%s1027_s3 + $0xd0] sm:$0xff] %vm284_vm0, %v246_v49  ;;  %312 = vst.msk [vmem:[%s1027_s3 + $0xd8] sm:$0xff] %vm284_vm0, %v247_v50  ;;  %v425_v58 = vunpack.c.l.bf16 %v499_v47  ;;  %v426_v59 = vunpack.c.h.bf16 %v499_v47  ;;  %v509_v47 = vld [vmem:[%s1024_s0 + $0xd8] sm:$0xff]  }
  0x1b   :  { %313 = vst.msk [vmem:[%s1027_s3 + $0xe0] sm:$0xff] %vm284_vm0, %v248_v51  ;;  %314 = vst.msk [vmem:[%s1027_s3 + $0xe8] sm:$0xff] %vm284_vm0, %v249_v52  ;;  %v429_v60 = vunpack.c.l.bf16 %v500_v48  ;;  %v430_v61 = vunpack.c.h.bf16 %v500_v48  ;;  %v181_v62 = vmul.f32 %v421_v56, %v540_v1  ;;  %v182_v63 = vmul.f32 %v422_v57, %v540_v1 }
  0x1c   :  { %315 = vst.msk [vmem:[%s1027_s3 + $0xf0] sm:$0xff] %vm284_vm0, %v250_v54  ;;  %316 = vst.msk [vmem:[%s1027_s3 + $0xf8] sm:$0xff] %vm284_vm0, %v251_v55  ;;  %v433_v0 = vunpack.c.l.bf16 %v501_v53  ;;  %v434_v2 = vunpack.c.h.bf16 %v501_v53  ;;  %v183_v3 = vmul.f32 %v425_v58, %v540_v1  ;;  %v184_v4 = vmul.f32 %v426_v59, %v540_v1 }
  0x1d   :  { %v185_v5 = vmul.f32 %v429_v60, %v540_v1  ;;  %v186_v6 = vmul.f32 %v430_v61, %v540_v1  ;;  %v252_v9 = vadd.f32 %v554_v7, %v181_v62  ;;  %v253_v10 = vadd.f32 %v554_v7, %v182_v63 }
  0x1e   :  { %v187_v11 = vmul.f32 %v433_v0, %v540_v1  ;;  %v188_v12 = vmul.f32 %v434_v2, %v540_v1  ;;  %v254_v15 = vadd.f32 %v554_v7, %v183_v3  ;;  %v255_v16 = vadd.f32 %v554_v7, %v184_v4  ;;  %v510_v0 = vld [vmem:[%s1024_s0 + $0xe0] sm:$0xff]  }
  0x1f   :  { %v256_v17 = vadd.f32 %v554_v7, %v185_v5  ;;  %v257_v18 = vadd.f32 %v554_v7, %v186_v6  ;;  %317 = vst.msk [vmem:[%s1027_s3 + $0x100] sm:$0xff] %vm284_vm0, %v252_v9  ;;  %318 = vst.msk [vmem:[%s1027_s3 + $0x108] sm:$0xff] %vm284_vm0, %v253_v10  ;;  %v437_v22 = vunpack.c.l.bf16 %v502_v8  ;;  %v438_v23 = vunpack.c.h.bf16 %v502_v8  ;;  %v511_v6 = vld [vmem:[%s1024_s0 + $0xe8] sm:$0xff]   ;;  %v512_v8 = vld [vmem:[%s1024_s0 + $0xf0] sm:$0xff]  }
  0x20   :  { %v258_v20 = vadd.f32 %v554_v7, %v187_v11  ;;  %v259_v21 = vadd.f32 %v554_v7, %v188_v12  ;;  %319 = vst.msk [vmem:[%s1027_s3 + $0x110] sm:$0xff] %vm284_vm0, %v254_v15  ;;  %320 = vst.msk [vmem:[%s1027_s3 + $0x118] sm:$0xff] %vm284_vm0, %v255_v16  ;;  %v441_v24 = vunpack.c.l.bf16 %v503_v13  ;;  %v442_v25 = vunpack.c.h.bf16 %v503_v13  ;;  %v513_v13 = vld [vmem:[%s1024_s0 + $0xf8] sm:$0xff]  }
  0x21   :  { %321 = vst.msk [vmem:[%s1027_s3 + $0x120] sm:$0xff] %vm284_vm0, %v256_v17  ;;  %322 = vst.msk [vmem:[%s1027_s3 + $0x128] sm:$0xff] %vm284_vm0, %v257_v18  ;;  %v445_v26 = vunpack.c.l.bf16 %v504_v14  ;;  %v446_v27 = vunpack.c.h.bf16 %v504_v14  ;;  %v189_v28 = vmul.f32 %v437_v22, %v540_v1  ;;  %v190_v29 = vmul.f32 %v438_v23, %v540_v1 }
  0x22   :  { %323 = vst.msk [vmem:[%s1027_s3 + $0x130] sm:$0xff] %vm284_vm0, %v258_v20  ;;  %324 = vst.msk [vmem:[%s1027_s3 + $0x138] sm:$0xff] %vm284_vm0, %v259_v21  ;;  %v449_v30 = vunpack.c.l.bf16 %v505_v19  ;;  %v450_v31 = vunpack.c.h.bf16 %v505_v19  ;;  %v191_v32 = vmul.f32 %v441_v24, %v540_v1  ;;  %v192_v33 = vmul.f32 %v442_v25, %v540_v1 }
  0x23   :  { %v193_v34 = vmul.f32 %v445_v26, %v540_v1  ;;  %v194_v35 = vmul.f32 %v446_v27, %v540_v1  ;;  %v260_v37 = vadd.f32 %v554_v7, %v189_v28  ;;  %v261_v38 = vadd.f32 %v554_v7, %v190_v29 }
  0x24   :  { %v195_v39 = vmul.f32 %v449_v30, %v540_v1  ;;  %v196_v40 = vmul.f32 %v450_v31, %v540_v1  ;;  %v262_v43 = vadd.f32 %v554_v7, %v191_v32  ;;  %v263_v44 = vadd.f32 %v554_v7, %v192_v33 }
  0x25   :  { %v264_v45 = vadd.f32 %v554_v7, %v193_v34  ;;  %v265_v46 = vadd.f32 %v554_v7, %v194_v35  ;;  %325 = vst.msk [vmem:[%s1027_s3 + $0x140] sm:$0xff] %vm284_vm0, %v260_v37  ;;  %326 = vst.msk [vmem:[%s1027_s3 + $0x148] sm:$0xff] %vm284_vm0, %v261_v38  ;;  %v453_v50 = vunpack.c.l.bf16 %v506_v36  ;;  %v454_v51 = vunpack.c.h.bf16 %v506_v36 }
  0x26   :  { %v266_v48 = vadd.f32 %v554_v7, %v195_v39  ;;  %v267_v49 = vadd.f32 %v554_v7, %v196_v40  ;;  %327 = vst.msk [vmem:[%s1027_s3 + $0x150] sm:$0xff] %vm284_vm0, %v262_v43  ;;  %328 = vst.msk [vmem:[%s1027_s3 + $0x158] sm:$0xff] %vm284_vm0, %v263_v44  ;;  %v457_v52 = vunpack.c.l.bf16 %v507_v41  ;;  %v458_v53 = vunpack.c.h.bf16 %v507_v41 }
  0x27   :  { %329 = vst.msk [vmem:[%s1027_s3 + $0x160] sm:$0xff] %vm284_vm0, %v264_v45  ;;  %330 = vst.msk [vmem:[%s1027_s3 + $0x168] sm:$0xff] %vm284_vm0, %v265_v46  ;;  %v461_v54 = vunpack.c.l.bf16 %v508_v42  ;;  %v462_v55 = vunpack.c.h.bf16 %v508_v42  ;;  %v197_v56 = vmul.f32 %v453_v50, %v540_v1  ;;  %v198_v57 = vmul.f32 %v454_v51, %v540_v1 }
  0x28   :  { %331 = vst.msk [vmem:[%s1027_s3 + $0x170] sm:$0xff] %vm284_vm0, %v266_v48  ;;  %332 = vst.msk [vmem:[%s1027_s3 + $0x178] sm:$0xff] %vm284_vm0, %v267_v49  ;;  %v465_v58 = vunpack.c.l.bf16 %v509_v47  ;;  %v466_v59 = vunpack.c.h.bf16 %v509_v47  ;;  %v199_v60 = vmul.f32 %v457_v52, %v540_v1  ;;  %v200_v61 = vmul.f32 %v458_v53, %v540_v1 }
  0x29   :  { %v201_v62 = vmul.f32 %v461_v54, %v540_v1  ;;  %v202_v63 = vmul.f32 %v462_v55, %v540_v1  ;;  %v268_v2 = vadd.f32 %v554_v7, %v197_v56  ;;  %v269_v3 = vadd.f32 %v554_v7, %v198_v57 }
  0x2a   :  { %v203_v4 = vmul.f32 %v465_v58, %v540_v1  ;;  %v204_v5 = vmul.f32 %v466_v59, %v540_v1  ;;  %v270_v9 = vadd.f32 %v554_v7, %v199_v60  ;;  %v271_v10 = vadd.f32 %v554_v7, %v200_v61 }
  0x2b   :  { %v272_v11 = vadd.f32 %v554_v7, %v201_v62  ;;  %v273_v12 = vadd.f32 %v554_v7, %v202_v63  ;;  %333 = vst.msk [vmem:[%s1027_s3 + $0x180] sm:$0xff] %vm284_vm0, %v268_v2  ;;  %334 = vst.msk [vmem:[%s1027_s3 + $0x188] sm:$0xff] %vm284_vm0, %v269_v3  ;;  %v469_v16 = vunpack.c.l.bf16 %v510_v0  ;;  %v470_v17 = vunpack.c.h.bf16 %v510_v0 }
  0x2c   :  { %v274_v14 = vadd.f32 %v554_v7, %v203_v4  ;;  %v275_v15 = vadd.f32 %v554_v7, %v204_v5  ;;  %335 = vst.msk [vmem:[%s1027_s3 + $0x190] sm:$0xff] %vm284_vm0, %v270_v9  ;;  %336 = vst.msk [vmem:[%s1027_s3 + $0x198] sm:$0xff] %vm284_vm0, %v271_v10  ;;  %v473_v18 = vunpack.c.l.bf16 %v511_v6  ;;  %v474_v19 = vunpack.c.h.bf16 %v511_v6 }
  0x2d   :  { %337 = vst.msk [vmem:[%s1027_s3 + $0x1a0] sm:$0xff] %vm284_vm0, %v272_v11  ;;  %338 = vst.msk [vmem:[%s1027_s3 + $0x1a8] sm:$0xff] %vm284_vm0, %v273_v12  ;;  %v477_v20 = vunpack.c.l.bf16 %v512_v8  ;;  %v478_v21 = vunpack.c.h.bf16 %v512_v8  ;;  %v205_v22 = vmul.f32 %v469_v16, %v540_v1  ;;  %v206_v23 = vmul.f32 %v470_v17, %v540_v1 }
  0x2e   :  { %339 = vst.msk [vmem:[%s1027_s3 + $0x1b0] sm:$0xff] %vm284_vm0, %v274_v14  ;;  %340 = vst.msk [vmem:[%s1027_s3 + $0x1b8] sm:$0xff] %vm284_vm0, %v275_v15  ;;  %v481_v24 = vunpack.c.l.bf16 %v513_v13  ;;  %v482_v25 = vunpack.c.h.bf16 %v513_v13  ;;  %v207_v26 = vmul.f32 %v473_v18, %v540_v1  ;;  %v208_v27 = vmul.f32 %v474_v19, %v540_v1 }
  0x2f   :  { %v209_v28 = vmul.f32 %v477_v20, %v540_v1  ;;  %v210_v29 = vmul.f32 %v478_v21, %v540_v1  ;;  %v276_v30 = vadd.f32 %v554_v7, %v205_v22  ;;  %v277_v31 = vadd.f32 %v554_v7, %v206_v23 }
  0x30   :  { %v211_v32 = vmul.f32 %v481_v24, %v540_v1  ;;  %v212_v33 = vmul.f32 %v482_v25, %v540_v1  ;;  %v278_v34 = vadd.f32 %v554_v7, %v207_v26  ;;  %v279_v35 = vadd.f32 %v554_v7, %v208_v27 }
  0x31   :  { %v280_v36 = vadd.f32 %v554_v7, %v209_v28  ;;  %v281_v37 = vadd.f32 %v554_v7, %v210_v29  ;;  %341 = vst.msk [vmem:[%s1027_s3 + $0x1c0] sm:$0xff] %vm284_vm0, %v276_v30  ;;  %342 = vst.msk [vmem:[%s1027_s3 + $0x1c8] sm:$0xff] %vm284_vm0, %v277_v31 }
  0x32   :  { %v282_v1 = vadd.f32 %v554_v7, %v211_v32  ;;  %v283_v38 = vadd.f32 %v554_v7, %v212_v33  ;;  %343 = vst.msk [vmem:[%s1027_s3 + $0x1d0] sm:$0xff] %vm284_vm0, %v278_v34  ;;  %344 = vst.msk [vmem:[%s1027_s3 + $0x1d8] sm:$0xff] %vm284_vm0, %v279_v35 }
  0x33   :  { %345 = vst.msk [vmem:[%s1027_s3 + $0x1e0] sm:$0xff] %vm284_vm0, %v280_v36  ;;  %346 = vst.msk [vmem:[%s1027_s3 + $0x1e8] sm:$0xff] %vm284_vm0, %v281_v37 }
  0x34   :  { %347 = vst.msk [vmem:[%s1027_s3 + $0x1f0] sm:$0xff] %vm284_vm0, %v282_v1  ;;  %348 = vst.msk [vmem:[%s1027_s3 + $0x1f8] sm:$0xff] %vm284_vm0, %v283_v38 }

// kernel: basic_conv.2
= control target key start
LH: loop header
LB: loop body
LE: loop exit
PB: predicated region body
PF: predicated region fallthrough
CT: control target
= control target key end

     0   :  { %vm398_vm0 = vcmask 1041408   ;;  %vm301_vm1 = vcmask 293888   ;;  %vm1155_vm2 = vcmask 60416   ;;  %v1604_v37 = vmov 0.0   ;;  %s2265_s1 = inlined_call_operand.vmem [shape: bf16[36,128], index: 1, kind: input, shape index: {}]   ;;  %s2266_s0 = inlined_call_operand.vmem [shape: bf16[512,36], index: 0, kind: input, shape index: {}]   ;;  %s2267_s2 = inlined_call_operand.vmem [shape: f32[1,128], index: 2, kind: output, shape index: {0}]   ;;  %s2268_s3 = inlined_call_operand.vmem [shape: f32[1,128], index: 3, kind: output, shape index: {1}]   ;;  %s2269_s4 = inlined_call_operand.vmem [shape: bf16[512,8], index: 4, kind: output, shape index: {2}]  }
   0x1   :  { %v1569_v0 = vld [vmem:[%s2265_s1 + $0x10] ss:$0 sps:$4 sm:$0x33]   ;;  %v1570_v1 = vld [vmem:[%s2265_s1 + $0x8] sm:$0xff]   ;;  %v1572_v3 = vld [vmem:[%s2266_s0] sm:$0xff]   ;;  %55 = vst [vmem:[%s2267_s2] sm:$0x1] %v1604_v37 }
   0x2   :  { %1566 = vmatprep.subr.msk.bf16.mxu0 %vm398_vm0, %v1569_v0  ;;  %v400_v2 = vsel %vm398_vm0, %v1569_v0, 0  ;;  %1567 = vmatprep.subr.msk.bf16.mxu1 %vm398_vm0, %v1569_v0  ;;  %v1571_v4 = vld [vmem:[%s2265_s1] sm:$0xff]   ;;  %v1573_v5 = vld [vmem:[%s2266_s0 + $0x8] sm:$0xff]   ;;  %v1574_v6 = vld [vmem:[%s2266_s0 + $0x10] sm:$0xff]   ;;  %56 = vst [vmem:[%s2268_s3] sm:$0x1] %v1604_v37 }
   0x3   :  { %1491 = vmatpush3.bf16.msra.mxu0 %v400_v2  ;;  %1563 = vmatpush3.bf16.msra.mxu1 %v400_v2  ;;  %v1575_v7 = vld [vmem:[%s2266_s0 + $0x18] sm:$0xff]   ;;  %v1576_v8 = vld [vmem:[%s2266_s0 + $0x20] sm:$0xff]   ;;  %v1589_v10 = vld [vmem:[%s2266_s0 + $0x88] sm:$0xff]  }
   0x4   :  { %1492 = vmatprep.subr.bf16.mxu0 %v1570_v1  ;;  %1561 = vmatprep.subr.bf16.mxu1 %v1570_v1  ;;  %v1588_v9 = vld [vmem:[%s2266_s0 + $0x80] sm:$0xff]   ;;  %v1590_v11 = vld [vmem:[%s2266_s0 + $0x90] sm:$0xff]   ;;  %v1577_v12 = vld [vmem:[%s2266_s0 + $0x28] sm:$0xff]  }
   0x5   :  { %1496 = vmatprep.mubr.msk.bf16.mxu0 %vm301_vm1, %v1572_v3  ;;  %1528 = vmatprep.mubr.msk.bf16.mxu1 %vm301_vm1, %v1588_v9  ;;  %v1578_v13 = vld [vmem:[%s2266_s0 + $0x30] sm:$0xff]   ;;  %v1591_v14 = vld [vmem:[%s2266_s0 + $0x98] sm:$0xff]   ;;  %v1592_v15 = vld [vmem:[%s2266_s0 + $0xa0] sm:$0xff]  }
   0x6   :  { %v1579_v16 = vld [vmem:[%s2266_s0 + $0x38] sm:$0xff]   ;;  %v1593_v17 = vld [vmem:[%s2266_s0 + $0xa8] sm:$0xff]   ;;  %v1580_v18 = vld [vmem:[%s2266_s0 + $0x40] sm:$0xff]  }
   0x7   :  { %1493 = vmatpush3.bf16.msra.mxu0 %v1570_v1  ;;  %1564 = vmatpush3.bf16.msra.mxu1 %v1570_v1  ;;  %v1594_v19 = vld [vmem:[%s2266_s0 + $0xb0] sm:$0xff]   ;;  %v1581_v20 = vld [vmem:[%s2266_s0 + $0x48] sm:$0xff]   ;;  %v1595_v21 = vld [vmem:[%s2266_s0 + $0xb8] sm:$0xff]  }
   0x8   :  { %1494 = vmatprep.subr.bf16.mxu0 %v1571_v4  ;;  %1562 = vmatprep.subr.bf16.mxu1 %v1571_v4  ;;  %v1582_v22 = vld [vmem:[%s2266_s0 + $0x50] sm:$0xff]   ;;  %v1596_v23 = vld [vmem:[%s2266_s0 + $0xc0] sm:$0xff]   ;;  %v1583_v24 = vld [vmem:[%s2266_s0 + $0x58] sm:$0xff]  }
   0x9   :  { %v1597_v25 = vld [vmem:[%s2266_s0 + $0xc8] sm:$0xff]   ;;  %v1584_v26 = vld [vmem:[%s2266_s0 + $0x60] sm:$0xff]   ;;  %v1598_v27 = vld [vmem:[%s2266_s0 + $0xd0] sm:$0xff]  }
   0xa   :  { %v1585_v28 = vld [vmem:[%s2266_s0 + $0x68] sm:$0xff]   ;;  %v1599_v29 = vld [vmem:[%s2266_s0 + $0xd8] sm:$0xff]   ;;  %v1586_v30 = vld [vmem:[%s2266_s0 + $0x70] sm:$0xff]  }
   0xb   :  { %1495 = vmatpush3.bf16.msra.mxu0 %v1571_v4  ;;  %1565 = vmatpush3.bf16.msra.mxu1 %v1571_v4  ;;  %v1600_v31 = vld [vmem:[%s2266_s0 + $0xe0] sm:$0xff]   ;;  %v1587_v32 = vld [vmem:[%s2266_s0 + $0x78] sm:$0xff]   ;;  %v1601_v33 = vld [vmem:[%s2266_s0 + $0xe8] sm:$0xff]  }
   0xc   :  { %v1602_v34 = vld [vmem:[%s2266_s0 + $0xf0] sm:$0xff]   ;;  %v1603_v35 = vld [vmem:[%s2266_s0 + $0xf8] sm:$0xff]  }
   0xe   :  { %1497 = vmatmul.mubr.msk.bf16.vlgmr.msra.gmra.mxu0 %vm301_vm1, %v1573_v5  ;;  %1529 = vmatmul.mubr.msk.bf16.vlgmr.msra.gmra.mxu1 %vm301_vm1, %v1589_v10 }
   0xf   :  { %1500 = vmatprep.mubr.msk.bf16.mxu0 %vm301_vm1, %v1574_v6  ;;  %1532 = vmatprep.mubr.msk.bf16.mxu1 %vm301_vm1, %v1590_v11 }
  0x16   :  { %1501 = vmatmul.mubr.msk.bf16.gmra.mxu0 %vm301_vm1, %v1575_v7  ;;  %1533 = vmatmul.mubr.msk.bf16.gmra.mxu1 %vm301_vm1, %v1591_v14 }
  0x17   :  { %1504 = vmatprep.mubr.msk.bf16.mxu0 %vm301_vm1, %v1576_v8  ;;  %1536 = vmatprep.mubr.msk.bf16.mxu1 %vm301_vm1, %v1592_v15 }
  0x1e   :  { %1505 = vmatmul.mubr.msk.bf16.gmra.mxu0 %vm301_vm1, %v1577_v12  ;;  %1537 = vmatmul.mubr.msk.bf16.gmra.mxu1 %vm301_vm1, %v1593_v17 }
  0x1f   :  { %1508 = vmatprep.mubr.msk.bf16.mxu0 %vm301_vm1, %v1578_v13  ;;  %1540 = vmatprep.mubr.msk.bf16.mxu1 %vm301_vm1, %v1594_v19 }
  0x26   :  { %1509 = vmatmul.mubr.msk.bf16.gmra.mxu0 %vm301_vm1, %v1579_v16  ;;  %1541 = vmatmul.mubr.msk.bf16.gmra.mxu1 %vm301_vm1, %v1595_v21 }
  0x27   :  { %1512 = vmatprep.mubr.msk.bf16.mxu0 %vm301_vm1, %v1580_v18  ;;  %1544 = vmatprep.mubr.msk.bf16.mxu1 %vm301_vm1, %v1596_v23 }
  0x2e   :  { %1513 = vmatmul.mubr.msk.bf16.gmra.mxu0 %vm301_vm1, %v1581_v20  ;;  %1545 = vmatmul.mubr.msk.bf16.gmra.mxu1 %vm301_vm1, %v1597_v25 }
  0x2f   :  { %1516 = vmatprep.mubr.msk.bf16.mxu0 %vm301_vm1, %v1582_v22  ;;  %1548 = vmatprep.mubr.msk.bf16.mxu1 %vm301_vm1, %v1598_v27 }
  0x36   :  { %1517 = vmatmul.mubr.msk.bf16.gmra.mxu0 %vm301_vm1, %v1583_v24  ;;  %1549 = vmatmul.mubr.msk.bf16.gmra.mxu1 %vm301_vm1, %v1599_v29 }
  0x37   :  { %1520 = vmatprep.mubr.msk.bf16.mxu0 %vm301_vm1, %v1584_v26  ;;  %1552 = vmatprep.mubr.msk.bf16.mxu1 %vm301_vm1, %v1600_v31 }
  0x3e   :  { %1521 = vmatmul.mubr.msk.bf16.gmra.mxu0 %vm301_vm1, %v1585_v28  ;;  %1553 = vmatmul.mubr.msk.bf16.gmra.mxu1 %vm301_vm1, %v1601_v33 }
  0x3f   :  { %1524 = vmatprep.mubr.msk.bf16.mxu0 %vm301_vm1, %v1586_v30  ;;  %1556 = vmatprep.mubr.msk.bf16.mxu1 %vm301_vm1, %v1602_v34 }
  0x46   :  { %1525 = vmatmul.mubr.msk.bf16.gmra.mxu0 %vm301_vm1, %v1587_v32  ;;  %1557 = vmatmul.mubr.msk.bf16.gmra.mxu1 %vm301_vm1, %v1603_v35 }
  0xce   :  { %v1498_v36 = vpop.f32.mrf.mxu0  ;;  %v1785_v49 = vpop.f32.mrf.mxu1 }
  0xcf   :  { %v1393_v38 = vpack.c.bf16 %v1498_v36, %v1498_v36  ;;  %v766_v50 = vmul.f32 %v1498_v36, %v1498_v36  ;;  %v1425_v55 = vpack.c.bf16 %v1785_v49, %v1785_v49 }
  0xd0   :  { %v436_v39 = vpop.f32.mrf.mxu0  ;;  %v1793_v56 = vpop.f32.mrf.mxu1 }
  0xd1   :  { %1158 = vst.msk [vmem:[%s2269_s4 + $0x8] sm:$0xf] %vm1155_vm2, %v1393_v38  ;;  %v1391_v40 = vpack.c.bf16 %v436_v39, %v436_v39  ;;  %v764_v44 = vmul.f32 %v436_v39, %v436_v39  ;;  %1190 = vst.msk [vmem:[%s2269_s4 + $0x88] sm:$0xf] %vm1155_vm2, %v1425_v55  ;;  %v1423_v62 = vpack.c.bf16 %v1793_v56, %v1793_v56 }
  0xd2   :  { %v1499_v41 = vpop.f32.mrf.mxu0  ;;  %v1805_v63 = vpop.f32.mrf.mxu1 }
  0xd3   :  { %1156 = vst.msk [vmem:[%s2269_s4] sm:$0xf] %vm1155_vm2, %v1391_v40  ;;  %v1394_v42 = vpack.c.bf16 %v1499_v41, %v1499_v41  ;;  %v767_v57 = vmul.f32 %v1499_v41, %v1499_v41  ;;  %1188 = vst.msk [vmem:[%s2269_s4 + $0x80] sm:$0xf] %vm1155_vm2, %v1423_v62  ;;  %v1426_v5 = vpack.c.bf16 %v1805_v63, %v1805_v63 }
  0xd4   :  { %v439_v43 = vpop.f32.mrf.mxu0  ;;  %v1817_v6 = vpop.f32.mrf.mxu1 }
  0xd5   :  { %1159 = vst.msk [vmem:[%s2269_s4 + $0xc] sm:$0xf] %vm1155_vm2, %v1394_v42  ;;  %v692_v45 = vadd.f32 %v439_v43, %v436_v39  ;;  %v765_v46 = vmul.f32 %v439_v43, %v439_v43  ;;  %v1392_v47 = vpack.c.bf16 %v439_v43, %v439_v43  ;;  %1191 = vst.msk [vmem:[%s2269_s4 + $0x8c] sm:$0xf] %vm1155_vm2, %v1426_v5 }
  0xd6   :  { %v1502_v48 = vpop.f32.mrf.mxu0  ;;  %v1424_v12 = vpack.c.bf16 %v1817_v6, %v1817_v6  ;;  %v1829_v13 = vpop.f32.mrf.mxu1 }
  0xd7   :  { %v693_v51 = vadd.f32 %v1498_v36, %v692_v45  ;;  %v828_v52 = vadd.f32 %v765_v46, %v764_v44  ;;  %1157 = vst.msk [vmem:[%s2269_s4 + $0x4] sm:$0xf] %vm1155_vm2, %v1392_v47  ;;  %v1397_v53 = vpack.c.bf16 %v1502_v48, %v1502_v48  ;;  %v770_v14 = vmul.f32 %v1502_v48, %v1502_v48 }
  0xd8   :  { %v452_v54 = vpop.f32.mrf.mxu0  ;;  %1189 = vst.msk [vmem:[%s2269_s4 + $0x84] sm:$0xf] %vm1155_vm2, %v1424_v12  ;;  %v1429_v19 = vpack.c.bf16 %v1829_v13, %v1829_v13  ;;  %v1841_v20 = vpop.f32.mrf.mxu1 }
  0xd9   :  { %v829_v58 = vadd.f32 %v828_v52, %v766_v50  ;;  %1162 = vst.msk [vmem:[%s2269_s4 + $0x18] sm:$0xf] %vm1155_vm2, %v1397_v53  ;;  %v694_v59 = vadd.f32 %v1499_v41, %v693_v51  ;;  %v1395_v60 = vpack.c.bf16 %v452_v54, %v452_v54  ;;  %v768_v1 = vmul.f32 %v452_v54, %v452_v54 }
  0xda   :  { %v1503_v61 = vpop.f32.mrf.mxu0  ;;  %1194 = vst.msk [vmem:[%s2269_s4 + $0x98] sm:$0xf] %vm1155_vm2, %v1429_v19  ;;  %v1427_v26 = vpack.c.bf16 %v1841_v20, %v1841_v20  ;;  %v1853_v27 = vpop.f32.mrf.mxu1 }
  0xdb   :  { %v695_v0 = vadd.f32 %v694_v59, %v452_v54  ;;  %v830_v2 = vadd.f32 %v829_v58, %v767_v57  ;;  %1160 = vst.msk [vmem:[%s2269_s4 + $0x10] sm:$0xf] %vm1155_vm2, %v1395_v60  ;;  %v1398_v3 = vpack.c.bf16 %v1503_v61, %v1503_v61  ;;  %v771_v21 = vmul.f32 %v1503_v61, %v1503_v61 }
  0xdc   :  { %v455_v4 = vpop.f32.mrf.mxu0  ;;  %1192 = vst.msk [vmem:[%s2269_s4 + $0x90] sm:$0xf] %vm1155_vm2, %v1427_v26  ;;  %v1430_v33 = vpack.c.bf16 %v1853_v27, %v1853_v27  ;;  %v1865_v34 = vpop.f32.mrf.mxu1 }
  0xdd   :  { %v831_v7 = vadd.f32 %v830_v2, %v768_v1  ;;  %1163 = vst.msk [vmem:[%s2269_s4 + $0x1c] sm:$0xf] %vm1155_vm2, %v1398_v3  ;;  %v696_v8 = vadd.f32 %v695_v0, %v455_v4  ;;  %v769_v9 = vmul.f32 %v455_v4, %v455_v4  ;;  %v1396_v10 = vpack.c.bf16 %v455_v4, %v455_v4 }
  0xde   :  { %v1506_v11 = vpop.f32.mrf.mxu0  ;;  %1195 = vst.msk [vmem:[%s2269_s4 + $0x9c] sm:$0xf] %vm1155_vm2, %v1430_v33  ;;  %v1428_v40 = vpack.c.bf16 %v1865_v34, %v1865_v34  ;;  %v1877_v41 = vpop.f32.mrf.mxu1 }
  0xdf   :  { %v697_v15 = vadd.f32 %v1502_v48, %v696_v8  ;;  %v832_v16 = vadd.f32 %v831_v7, %v769_v9  ;;  %1161 = vst.msk [vmem:[%s2269_s4 + $0x14] sm:$0xf] %vm1155_vm2, %v1396_v10  ;;  %v1401_v17 = vpack.c.bf16 %v1506_v11, %v1506_v11  ;;  %v774_v42 = vmul.f32 %v1506_v11, %v1506_v11 }
  0xe0   :  { %v468_v18 = vpop.f32.mrf.mxu0  ;;  %1193 = vst.msk [vmem:[%s2269_s4 + $0x94] sm:$0xf] %vm1155_vm2, %v1428_v40  ;;  %v1433_v47 = vpack.c.bf16 %v1877_v41, %v1877_v41  ;;  %v1889_v48 = vpop.f32.mrf.mxu1 }
  0xe1   :  { %v833_v22 = vadd.f32 %v832_v16, %v770_v14  ;;  %1166 = vst.msk [vmem:[%s2269_s4 + $0x28] sm:$0xf] %vm1155_vm2, %v1401_v17  ;;  %v698_v23 = vadd.f32 %v1503_v61, %v697_v15  ;;  %v1399_v24 = vpack.c.bf16 %v468_v18, %v468_v18  ;;  %v772_v29 = vmul.f32 %v468_v18, %v468_v18 }
  0xe2   :  { %v1507_v25 = vpop.f32.mrf.mxu0  ;;  %1198 = vst.msk [vmem:[%s2269_s4 + $0xa8] sm:$0xf] %vm1155_vm2, %v1433_v47  ;;  %v1431_v55 = vpack.c.bf16 %v1889_v48, %v1889_v48  ;;  %v1901_v57 = vpop.f32.mrf.mxu1 }
  0xe3   :  { %v699_v28 = vadd.f32 %v698_v23, %v468_v18  ;;  %v834_v30 = vadd.f32 %v833_v22, %v771_v21  ;;  %1164 = vst.msk [vmem:[%s2269_s4 + $0x20] sm:$0xf] %vm1155_vm2, %v1399_v24  ;;  %v1402_v31 = vpack.c.bf16 %v1507_v25, %v1507_v25  ;;  %v775_v50 = vmul.f32 %v1507_v25, %v1507_v25 }
  0xe4   :  { %v471_v32 = vpop.f32.mrf.mxu0  ;;  %1196 = vst.msk [vmem:[%s2269_s4 + $0xa0] sm:$0xf] %vm1155_vm2, %v1431_v55  ;;  %v1434_v0 = vpack.c.bf16 %v1901_v57, %v1901_v57  ;;  %v1913_v1 = vpop.f32.mrf.mxu1 }
  0xe5   :  { %v835_v35 = vadd.f32 %v834_v30, %v772_v29  ;;  %1167 = vst.msk [vmem:[%s2269_s4 + $0x2c] sm:$0xf] %vm1155_vm2, %v1402_v31  ;;  %v700_v36 = vadd.f32 %v699_v28, %v471_v32  ;;  %v773_v37 = vmul.f32 %v471_v32, %v471_v32  ;;  %v1400_v38 = vpack.c.bf16 %v471_v32, %v471_v32 }
  0xe6   :  { %v1510_v39 = vpop.f32.mrf.mxu0  ;;  %1199 = vst.msk [vmem:[%s2269_s4 + $0xac] sm:$0xf] %vm1155_vm2, %v1434_v0  ;;  %v1432_v8 = vpack.c.bf16 %v1913_v1, %v1913_v1  ;;  %v1925_v9 = vpop.f32.mrf.mxu1 }
  0xe7   :  { %v701_v43 = vadd.f32 %v1506_v11, %v700_v36  ;;  %v836_v44 = vadd.f32 %v835_v35, %v773_v37  ;;  %1165 = vst.msk [vmem:[%s2269_s4 + $0x24] sm:$0xf] %vm1155_vm2, %v1400_v38  ;;  %v1405_v45 = vpack.c.bf16 %v1510_v39, %v1510_v39  ;;  %v778_v10 = vmul.f32 %v1510_v39, %v1510_v39 }
  0xe8   :  { %v484_v46 = vpop.f32.mrf.mxu0  ;;  %1197 = vst.msk [vmem:[%s2269_s4 + $0xa4] sm:$0xf] %vm1155_vm2, %v1432_v8  ;;  %v1437_v16 = vpack.c.bf16 %v1925_v9, %v1925_v9  ;;  %v1937_v17 = vpop.f32.mrf.mxu1 }
  0xe9   :  { %v837_v51 = vadd.f32 %v836_v44, %v774_v42  ;;  %1170 = vst.msk [vmem:[%s2269_s4 + $0x38] sm:$0xf] %vm1155_vm2, %v1405_v45  ;;  %v702_v52 = vadd.f32 %v1507_v25, %v701_v43  ;;  %v1403_v53 = vpack.c.bf16 %v484_v46, %v484_v46  ;;  %v776_v59 = vmul.f32 %v484_v46, %v484_v46 }
  0xea   :  { %v1511_v54 = vpop.f32.mrf.mxu0  ;;  %1202 = vst.msk [vmem:[%s2269_s4 + $0xb8] sm:$0xf] %vm1155_vm2, %v1437_v16  ;;  %v1435_v24 = vpack.c.bf16 %v1937_v17, %v1937_v17  ;;  %v1949_v25 = vpop.f32.mrf.mxu1 }
  0xeb   :  { %v703_v58 = vadd.f32 %v702_v52, %v484_v46  ;;  %v838_v60 = vadd.f32 %v837_v51, %v775_v50  ;;  %1168 = vst.msk [vmem:[%s2269_s4 + $0x30] sm:$0xf] %vm1155_vm2, %v1403_v53  ;;  %v1406_v61 = vpack.c.bf16 %v1511_v54, %v1511_v54  ;;  %v779_v18 = vmul.f32 %v1511_v54, %v1511_v54 }
  0xec   :  { %v487_v62 = vpop.f32.mrf.mxu0  ;;  %1200 = vst.msk [vmem:[%s2269_s4 + $0xb0] sm:$0xf] %vm1155_vm2, %v1435_v24  ;;  %v1438_v32 = vpack.c.bf16 %v1949_v25, %v1949_v25  ;;  %v1961_v33 = vpop.f32.mrf.mxu1 }
  0xed   :  { %v839_v2 = vadd.f32 %v838_v60, %v776_v59  ;;  %1171 = vst.msk [vmem:[%s2269_s4 + $0x3c] sm:$0xf] %vm1155_vm2, %v1406_v61  ;;  %v704_v3 = vadd.f32 %v703_v58, %v487_v62  ;;  %v777_v4 = vmul.f32 %v487_v62, %v487_v62  ;;  %v1404_v5 = vpack.c.bf16 %v487_v62, %v487_v62 }
  0xee   :  { %v1514_v7 = vpop.f32.mrf.mxu0  ;;  %1203 = vst.msk [vmem:[%s2269_s4 + $0xbc] sm:$0xf] %vm1155_vm2, %v1438_v32  ;;  %v1436_v40 = vpack.c.bf16 %v1961_v33, %v1961_v33  ;;  %v1973_v42 = vpop.f32.mrf.mxu1 }
  0xef   :  { %v705_v11 = vadd.f32 %v1510_v39, %v704_v3  ;;  %v840_v12 = vadd.f32 %v839_v2, %v777_v4  ;;  %1169 = vst.msk [vmem:[%s2269_s4 + $0x34] sm:$0xf] %vm1155_vm2, %v1404_v5  ;;  %v1409_v14 = vpack.c.bf16 %v1514_v7, %v1514_v7  ;;  %v782_v43 = vmul.f32 %v1514_v7, %v1514_v7 }
  0xf0   :  { %v500_v15 = vpop.f32.mrf.mxu0  ;;  %1201 = vst.msk [vmem:[%s2269_s4 + $0xb4] sm:$0xf] %vm1155_vm2, %v1436_v40  ;;  %v1441_v50 = vpack.c.bf16 %v1973_v42, %v1973_v42  ;;  %v1985_v51 = vpop.f32.mrf.mxu1 }
  0xf1   :  { %v841_v19 = vadd.f32 %v840_v12, %v778_v10  ;;  %1174 = vst.msk [vmem:[%s2269_s4 + $0x48] sm:$0xf] %vm1155_vm2, %v1409_v14  ;;  %v706_v21 = vadd.f32 %v1511_v54, %v705_v11  ;;  %v1407_v22 = vpack.c.bf16 %v500_v15, %v500_v15  ;;  %v780_v28 = vmul.f32 %v500_v15, %v500_v15 }
  0xf2   :  { %v1515_v23 = vpop.f32.mrf.mxu0  ;;  %1206 = vst.msk [vmem:[%s2269_s4 + $0xc8] sm:$0xf] %vm1155_vm2, %v1441_v50  ;;  %v1439_v59 = vpack.c.bf16 %v1985_v51, %v1985_v51  ;;  %v1997_v60 = vpop.f32.mrf.mxu1 }
  0xf3   :  { %v707_v26 = vadd.f32 %v706_v21, %v500_v15  ;;  %v842_v29 = vadd.f32 %v841_v19, %v779_v18  ;;  %1172 = vst.msk [vmem:[%s2269_s4 + $0x40] sm:$0xf] %vm1155_vm2, %v1407_v22  ;;  %v1410_v30 = vpack.c.bf16 %v1515_v23, %v1515_v23  ;;  %v783_v52 = vmul.f32 %v1515_v23, %v1515_v23 }
  0xf4   :  { %v503_v31 = vpop.f32.mrf.mxu0  ;;  %1204 = vst.msk [vmem:[%s2269_s4 + $0xc0] sm:$0xf] %vm1155_vm2, %v1439_v59  ;;  %v1442_v4 = vpack.c.bf16 %v1997_v60, %v1997_v60  ;;  %v2009_v5 = vpop.f32.mrf.mxu1 }
  0xf5   :  { %v843_v35 = vadd.f32 %v842_v29, %v780_v28  ;;  %1175 = vst.msk [vmem:[%s2269_s4 + $0x4c] sm:$0xf] %vm1155_vm2, %v1410_v30  ;;  %v708_v36 = vadd.f32 %v707_v26, %v503_v31  ;;  %v781_v37 = vmul.f32 %v503_v31, %v503_v31  ;;  %v1408_v38 = vpack.c.bf16 %v503_v31, %v503_v31 }
  0xf6   :  { %v1518_v39 = vpop.f32.mrf.mxu0  ;;  %1207 = vst.msk [vmem:[%s2269_s4 + $0xcc] sm:$0xf] %vm1155_vm2, %v1442_v4  ;;  %v1440_v14 = vpack.c.bf16 %v2009_v5, %v2009_v5  ;;  %v2021_v15 = vpop.f32.mrf.mxu1 }
  0xf7   :  { %v709_v44 = vadd.f32 %v1514_v7, %v708_v36  ;;  %v844_v45 = vadd.f32 %v843_v35, %v781_v37  ;;  %1173 = vst.msk [vmem:[%s2269_s4 + $0x44] sm:$0xf] %vm1155_vm2, %v1408_v38  ;;  %v1413_v46 = vpack.c.bf16 %v1518_v39, %v1518_v39  ;;  %v786_v16 = vmul.f32 %v1518_v39, %v1518_v39 }
  0xf8   :  { %v516_v47 = vpop.f32.mrf.mxu0  ;;  %1205 = vst.msk [vmem:[%s2269_s4 + $0xc4] sm:$0xf] %vm1155_vm2, %v1440_v14  ;;  %v2033_v24 = vpop.f32.mrf.mxu1 }
  0xf9   :  { %v845_v53 = vadd.f32 %v844_v45, %v782_v43  ;;  %1178 = vst.msk [vmem:[%s2269_s4 + $0x58] sm:$0xf] %vm1155_vm2, %v1413_v46  ;;  %v710_v54 = vadd.f32 %v1515_v23, %v709_v44  ;;  %v1411_v55 = vpack.c.bf16 %v516_v47, %v516_v47  ;;  %v784_v62 = vmul.f32 %v516_v47, %v516_v47 }
  0xfa   :  { %v1519_v58 = vpop.f32.mrf.mxu0  ;;  %v1445_v23 = vpack.c.bf16 %v2021_v15, %v2021_v15  ;;  %v1443_v32 = vpack.c.bf16 %v2033_v24, %v2033_v24  ;;  %v2045_v35 = vpop.f32.mrf.mxu1 }
  0xfb   :  { %v711_v61 = vadd.f32 %v710_v54, %v516_v47  ;;  %v846_v0 = vadd.f32 %v845_v53, %v783_v52  ;;  %1176 = vst.msk [vmem:[%s2269_s4 + $0x50] sm:$0xf] %vm1155_vm2, %v1411_v55  ;;  %v1414_v2 = vpack.c.bf16 %v1519_v58, %v1519_v58  ;;  %v787_v26 = vmul.f32 %v1519_v58, %v1519_v58 }
  0xfc   :  { %v519_v3 = vpop.f32.mrf.mxu0  ;;  %1210 = vst.msk [vmem:[%s2269_s4 + $0xd8] sm:$0xf] %vm1155_vm2, %v1445_v23  ;;  %1208 = vst.msk [vmem:[%s2269_s4 + $0xd0] sm:$0xf] %vm1155_vm2, %v1443_v32  ;;  %v1446_v43 = vpack.c.bf16 %v2045_v35, %v2045_v35  ;;  %v2057_v44 = vpop.f32.mrf.mxu1 }
  0xfd   :  { %v847_v7 = vadd.f32 %v846_v0, %v784_v62  ;;  %1179 = vst.msk [vmem:[%s2269_s4 + $0x5c] sm:$0xf] %vm1155_vm2, %v1414_v2  ;;  %v712_v8 = vadd.f32 %v711_v61, %v519_v3  ;;  %v785_v10 = vmul.f32 %v519_v3, %v519_v3  ;;  %v1412_v11 = vpack.c.bf16 %v519_v3, %v519_v3 }
  0xfe   :  { %v1522_v12 = vpop.f32.mrf.mxu0  ;;  %1211 = vst.msk [vmem:[%s2269_s4 + $0xdc] sm:$0xf] %vm1155_vm2, %v1446_v43  ;;  %v1444_v53 = vpack.c.bf16 %v2057_v44, %v2057_v44  ;;  %v2069_v54 = vpop.f32.mrf.mxu1 }
  0xff   :  { %v713_v18 = vadd.f32 %v1518_v39, %v712_v8  ;;  %v848_v19 = vadd.f32 %v847_v7, %v785_v10  ;;  %1177 = vst.msk [vmem:[%s2269_s4 + $0x54] sm:$0xf] %vm1155_vm2, %v1412_v11  ;;  %v1417_v21 = vpack.c.bf16 %v1522_v12, %v1522_v12  ;;  %v790_v55 = vmul.f32 %v1522_v12, %v1522_v12 }
 0x100   :  { %v532_v22 = vpop.f32.mrf.mxu0  ;;  %1209 = vst.msk [vmem:[%s2269_s4 + $0xd4] sm:$0xf] %vm1155_vm2, %v1444_v53  ;;  %v1449_v0 = vpack.c.bf16 %v2069_v54, %v2069_v54  ;;  %v2081_v2 = vpop.f32.mrf.mxu1 }
 0x101   :  { %v849_v28 = vadd.f32 %v848_v19, %v786_v16  ;;  %1182 = vst.msk [vmem:[%s2269_s4 + $0x68] sm:$0xf] %vm1155_vm2, %v1417_v21  ;;  %v714_v29 = vadd.f32 %v1519_v58, %v713_v18  ;;  %v1415_v30 = vpack.c.bf16 %v532_v22, %v532_v22  ;;  %v788_v37 = vmul.f32 %v532_v22, %v532_v22 }
 0x102   :  { %v1523_v31 = vpop.f32.mrf.mxu0  ;;  %1214 = vst.msk [vmem:[%s2269_s4 + $0xe8] sm:$0xf] %vm1155_vm2, %v1449_v0  ;;  %v1447_v11 = vpack.c.bf16 %v2081_v2, %v2081_v2 }
 0x103   :  { %v715_v36 = vadd.f32 %v714_v29, %v532_v22  ;;  %v850_v38 = vadd.f32 %v849_v28, %v787_v26  ;;  %1180 = vst.msk [vmem:[%s2269_s4 + $0x60] sm:$0xf] %vm1155_vm2, %v1415_v30  ;;  %v1418_v39 = vpack.c.bf16 %v1523_v31, %v1523_v31  ;;  %v791_v3 = vmul.f32 %v1523_v31, %v1523_v31 }
 0x104   :  { %v535_v40 = vpop.f32.mrf.mxu0  ;;  %1212 = vst.msk [vmem:[%s2269_s4 + $0xe0] sm:$0xf] %vm1155_vm2, %v1447_v11 }
 0x105   :  { %v851_v45 = vadd.f32 %v850_v38, %v788_v37  ;;  %1183 = vst.msk [vmem:[%s2269_s4 + $0x6c] sm:$0xf] %vm1155_vm2, %v1418_v39  ;;  %v716_v46 = vadd.f32 %v715_v36, %v535_v40  ;;  %v789_v47 = vmul.f32 %v535_v40, %v535_v40  ;;  %v1416_v50 = vpack.c.bf16 %v535_v40, %v535_v40 }
 0x106   :  { %v1526_v52 = vpop.f32.mrf.mxu0 }
 0x107   :  { %v717_v58 = vadd.f32 %v1522_v12, %v716_v46  ;;  %v852_v59 = vadd.f32 %v851_v45, %v789_v47  ;;  %1181 = vst.msk [vmem:[%s2269_s4 + $0x64] sm:$0xf] %vm1155_vm2, %v1416_v50  ;;  %v1421_v61 = vpack.c.bf16 %v1526_v52, %v1526_v52  ;;  %v2093_v12 = vpop.f32.mrf.mxu1  ;;  %v794_v36 = vmul.f32 %v1526_v52, %v1526_v52 }
 0x108   :  { %v548_v62 = vpop.f32.mrf.mxu0  ;;  %v1450_v22 = vpack.c.bf16 %v2093_v12, %v2093_v12 }
 0x109   :  { %v853_v4 = vadd.f32 %v852_v59, %v790_v55  ;;  %1186 = vst.msk [vmem:[%s2269_s4 + $0x78] sm:$0xf] %vm1155_vm2, %v1421_v61  ;;  %v718_v7 = vadd.f32 %v1523_v31, %v717_v58  ;;  %v1419_v8 = vpack.c.bf16 %v548_v62, %v548_v62  ;;  %v792_v16 = vmul.f32 %v548_v62, %v548_v62  ;;  %v2105_v23 = vpop.f32.mrf.mxu1 }
 0x10a   :  { %v1527_v10 = vpop.f32.mrf.mxu0  ;;  %1215 = vst.msk [vmem:[%s2269_s4 + $0xec] sm:$0xf] %vm1155_vm2, %v1450_v22  ;;  %v1448_v31 = vpack.c.bf16 %v2105_v23, %v2105_v23 }
 0x10b   :  { %v719_v14 = vadd.f32 %v718_v7, %v548_v62  ;;  %v854_v18 = vadd.f32 %v853_v4, %v791_v3  ;;  %1184 = vst.msk [vmem:[%s2269_s4 + $0x70] sm:$0xf] %vm1155_vm2, %v1419_v8  ;;  %v1422_v19 = vpack.c.bf16 %v1527_v10, %v1527_v10  ;;  %v2117_v32 = vpop.f32.mrf.mxu1  ;;  %v795_v43 = vmul.f32 %v1527_v10, %v1527_v10 }
 0x10c   :  { %v551_v21 = vpop.f32.mrf.mxu0  ;;  %v1453_v39 = vpack.c.bf16 %v2117_v32, %v2117_v32  ;;  %1213 = vst.msk [vmem:[%s2269_s4 + $0xe4] sm:$0xf] %vm1155_vm2, %v1448_v31  ;;  %v797_v62 = vmul.f32 %v1817_v6, %v1817_v6  ;;  %v798_v3 = vmul.f32 %v1785_v49, %v1785_v49 }
 0x10d   :  { %v855_v26 = vadd.f32 %v854_v18, %v792_v16  ;;  %1187 = vst.msk [vmem:[%s2269_s4 + $0x7c] sm:$0xf] %vm1155_vm2, %v1422_v19  ;;  %v720_v28 = vadd.f32 %v719_v14, %v551_v21  ;;  %v793_v29 = vmul.f32 %v551_v21, %v551_v21  ;;  %v1420_v30 = vpack.c.bf16 %v551_v21, %v551_v21  ;;  %v2129_v40 = vpop.f32.mrf.mxu1 }
 0x10e   :  { %1218 = vst.msk [vmem:[%s2269_s4 + $0xf8] sm:$0xf] %vm1155_vm2, %v1453_v39  ;;  %v1451_v47 = vpack.c.bf16 %v2129_v40, %v2129_v40  ;;  %v800_v14 = vmul.f32 %v1841_v20, %v1841_v20  ;;  %v801_v19 = vmul.f32 %v1865_v34, %v1865_v34  ;;  %v802_v21 = vmul.f32 %v1829_v13, %v1829_v13 }
 0x10f   :  { %v721_v37 = vadd.f32 %v1526_v52, %v720_v28  ;;  %v856_v38 = vadd.f32 %v855_v26, %v793_v29  ;;  %1185 = vst.msk [vmem:[%s2269_s4 + $0x74] sm:$0xf] %vm1155_vm2, %v1420_v30  ;;  %v2137_v50 = vpop.f32.mrf.mxu1  ;;  %v796_v52 = vmul.f32 %v1793_v56, %v1793_v56  ;;  %v804_v30 = vmul.f32 %v1889_v48, %v1889_v48 }
 0x110   :  { %1216 = vst.msk [vmem:[%s2269_s4 + $0xf0] sm:$0xf] %vm1155_vm2, %v1451_v47  ;;  %v1454_v58 = vpack.c.bf16 %v2137_v50, %v2137_v50 }
 0x111   :  { %v722_v45 = vadd.f32 %v1527_v10, %v721_v37  ;;  %v857_v46 = vadd.f32 %v856_v38, %v794_v36  ;;  %v2148_v59 = vpop.f32.mrf.mxu1  ;;  %v805_v37 = vmul.f32 %v1913_v1, %v1913_v1 }
 0x112   :  { %1219 = vst.msk [vmem:[%s2269_s4 + $0xfc] sm:$0xf] %vm1155_vm2, %v1454_v58 }
 0x113   :  { %v858_v53 = vadd.f32 %v857_v46, %v795_v43  ;;  %v723_v55 = vadd.f32 %v722_v45, %v1793_v56  ;;  %v1452_v56 = vpack.c.bf16 %v2148_v59, %v2148_v59  ;;  %v808_v46 = vmul.f32 %v1937_v17, %v1937_v17 }
 0x115   :  { %v724_v61 = vadd.f32 %v723_v55, %v1817_v6  ;;  %v859_v0 = vadd.f32 %v858_v53, %v796_v52  ;;  %1217 = vst.msk [vmem:[%s2269_s4 + $0xf4] sm:$0xf] %vm1155_vm2, %v1452_v56  ;;  %v799_v6 = vmul.f32 %v1805_v63, %v1805_v63  ;;  %v809_v53 = vmul.f32 %v1961_v33, %v1961_v33 }
 0x117   :  { %v725_v4 = vadd.f32 %v1785_v49, %v724_v61  ;;  %v860_v7 = vadd.f32 %v859_v0, %v797_v62  ;;  %v812_v0 = vmul.f32 %v1985_v51, %v1985_v51 }
 0x119   :  { %v861_v8 = vadd.f32 %v860_v7, %v798_v3  ;;  %v726_v10 = vadd.f32 %v1805_v63, %v725_v4  ;;  %v803_v63 = vmul.f32 %v1853_v27, %v1853_v27  ;;  %v813_v4 = vmul.f32 %v2009_v5, %v2009_v5 }
 0x11b   :  { %v727_v11 = vadd.f32 %v726_v10, %v1841_v20  ;;  %v862_v16 = vadd.f32 %v861_v8, %v799_v6 }
 0x11d   :  { %v863_v18 = vadd.f32 %v862_v16, %v800_v14  ;;  %v728_v49 = vadd.f32 %v727_v11, %v1865_v34  ;;  %v816_v11 = vmul.f32 %v2033_v24, %v2033_v24 }
 0x11f   :  { %v729_v22 = vadd.f32 %v1829_v13, %v728_v49  ;;  %v864_v26 = vadd.f32 %v863_v18, %v801_v19  ;;  %v806_v13 = vmul.f32 %v1877_v41, %v1877_v41  ;;  %v817_v18 = vmul.f32 %v2057_v44, %v2057_v44 }
 0x121   :  { %v865_v28 = vadd.f32 %v864_v26, %v802_v21  ;;  %v730_v29 = vadd.f32 %v1853_v27, %v729_v22  ;;  %v807_v27 = vmul.f32 %v1901_v57, %v1901_v57  ;;  %v820_v26 = vmul.f32 %v2081_v2, %v2081_v2 }
 0x123   :  { %v731_v20 = vadd.f32 %v730_v29, %v1889_v48  ;;  %v866_v31 = vadd.f32 %v865_v28, %v803_v63  ;;  %v821_v29 = vmul.f32 %v2105_v23, %v2105_v23 }
 0x125   :  { %v867_v36 = vadd.f32 %v866_v31, %v804_v30  ;;  %v732_v34 = vadd.f32 %v731_v20, %v1913_v1 }
 0x127   :  { %v733_v38 = vadd.f32 %v1877_v41, %v732_v34  ;;  %v868_v39 = vadd.f32 %v867_v36, %v805_v37  ;;  %v810_v41 = vmul.f32 %v1925_v9, %v1925_v9  ;;  %v824_v34 = vmul.f32 %v2129_v40, %v2129_v40 }
 0x129   :  { %v869_v43 = vadd.f32 %v868_v39, %v806_v13  ;;  %v734_v45 = vadd.f32 %v1901_v57, %v733_v38  ;;  %v811_v57 = vmul.f32 %v1949_v25, %v1949_v25  ;;  %v825_v38 = vmul.f32 %v2148_v59, %v2148_v59 }
 0x12b   :  { %v735_v48 = vadd.f32 %v734_v45, %v1937_v17  ;;  %v870_v47 = vadd.f32 %v869_v43, %v807_v27 }
 0x12d   :  { %v871_v52 = vadd.f32 %v870_v47, %v808_v46  ;;  %v736_v1 = vadd.f32 %v735_v48, %v1961_v33 }
 0x12f   :  { %v737_v55 = vadd.f32 %v1925_v9, %v736_v1  ;;  %v872_v58 = vadd.f32 %v871_v52, %v809_v53  ;;  %v814_v9 = vmul.f32 %v1973_v42, %v1973_v42 }
 0x131   :  { %v873_v61 = vadd.f32 %v872_v58, %v810_v41  ;;  %v738_v62 = vadd.f32 %v1949_v25, %v737_v55  ;;  %v815_v25 = vmul.f32 %v1997_v60, %v1997_v60 }
 0x133   :  { %v739_v17 = vadd.f32 %v738_v62, %v1985_v51  ;;  %v874_v56 = vadd.f32 %v873_v61, %v811_v57 }
 0x135   :  { %v875_v3 = vadd.f32 %v874_v56, %v812_v0  ;;  %v740_v33 = vadd.f32 %v739_v17, %v2009_v5 }
 0x137   :  { %v741_v7 = vadd.f32 %v1973_v42, %v740_v33  ;;  %v876_v6 = vadd.f32 %v875_v3, %v813_v4  ;;  %v818_v42 = vmul.f32 %v2021_v15, %v2021_v15 }
 0x139   :  { %v877_v8 = vadd.f32 %v876_v6, %v814_v9  ;;  %v742_v10 = vadd.f32 %v1997_v60, %v741_v7  ;;  %v819_v60 = vmul.f32 %v2045_v35, %v2045_v35 }
 0x13b   :  { %v743_v51 = vadd.f32 %v742_v10, %v2033_v24  ;;  %v878_v14 = vadd.f32 %v877_v8, %v815_v25 }
 0x13d   :  { %v879_v16 = vadd.f32 %v878_v14, %v816_v11  ;;  %v744_v5 = vadd.f32 %v743_v51, %v2057_v44 }
 0x13f   :  { %v745_v49 = vadd.f32 %v2021_v15, %v744_v5  ;;  %v880_v19 = vadd.f32 %v879_v16, %v817_v18  ;;  %v822_v15 = vmul.f32 %v2069_v54, %v2069_v54 }
 0x141   :  { %v881_v21 = vadd.f32 %v880_v19, %v818_v42  ;;  %v746_v22 = vadd.f32 %v2045_v35, %v745_v49  ;;  %v823_v35 = vmul.f32 %v2093_v12, %v2093_v12 }
 0x143   :  { %v747_v24 = vadd.f32 %v746_v22, %v2081_v2  ;;  %v882_v63 = vadd.f32 %v881_v21, %v819_v60 }
 0x145   :  { %v883_v28 = vadd.f32 %v882_v63, %v820_v26  ;;  %v748_v44 = vadd.f32 %v747_v24, %v2105_v23 }
 0x147   :  { %v749_v20 = vadd.f32 %v2069_v54, %v748_v44  ;;  %v884_v30 = vadd.f32 %v883_v28, %v821_v29  ;;  %v826_v54 = vmul.f32 %v2117_v32, %v2117_v32 }
 0x149   :  { %v885_v31 = vadd.f32 %v884_v30, %v822_v15  ;;  %v750_v36 = vadd.f32 %v2093_v12, %v749_v20  ;;  %v827_v12 = vmul.f32 %v2137_v50, %v2137_v50 }
 0x14b   :  { %v751_v2 = vadd.f32 %v750_v36, %v2129_v40  ;;  %v886_v37 = vadd.f32 %v885_v31, %v823_v35 }
 0x14d   :  { %v887_v13 = vadd.f32 %v886_v37, %v824_v34  ;;  %v752_v23 = vadd.f32 %v751_v2, %v2148_v59 }
 0x14f   :  { %v753_v39 = vadd.f32 %v2117_v32, %v752_v23  ;;  %v888_v27 = vadd.f32 %v887_v13, %v825_v38  ;;  %v691_v32 = vld [vmem:[%s2267_s2] sm:$0x1] }
 0x151   :  { %v754_v43 = vadd.f32 %v2137_v50, %v753_v39  ;;  %v889_v45 = vadd.f32 %v888_v27, %v826_v54  ;;  %v763_v50 = vld [vmem:[%s2268_s3] sm:$0x1] }
 0x153   :  { %v755_v40 = vrot.slane %v754_v43, 4  ;;  %v890_v48 = vadd.f32 %v889_v45, %v827_v12 }
 0x155   :  { %v756_v46 = vadd.f32 %v755_v40, %v754_v43  ;;  %v891_v47 = vrot.slane %v890_v48, 4 }
 0x157   :  { %v757_v52 = vrot.slane %v756_v46, 2  ;;  %v892_v1 = vadd.f32 %v891_v47, %v890_v48 }
 0x159   :  { %v758_v53 = vadd.f32 %v757_v52, %v756_v46  ;;  %v893_v59 = vrot.slane %v892_v1, 2 }
 0x15b   :  { %v759_v41 = vrot.slane %v758_v53, 1  ;;  %v894_v55 = vadd.f32 %v893_v59, %v892_v1 }
 0x15d   :  { %v760_v58 = vadd.f32 %v759_v41, %v758_v53  ;;  %v895_v57 = vrot.slane %v894_v55, 1 }
 0x15f   :  { %v761_v61 = vadd.f32 %v760_v58, %v691_v32  ;;  %v896_v62 = vadd.f32 %v895_v57, %v894_v55 }
 0x161   :  { %762 = vst [vmem:[%s2267_s2] sm:$0x1] %v761_v61  ;;  %v897_v17 = vadd.f32 %v896_v62, %v763_v50 }
 0x163   :  { %898 = vst [vmem:[%s2268_s3] sm:$0x1] %v897_v17 }

</bundles_post_ra>
